<compile_context>
chip_gen: v6e
topology: v6e:2x2x1
jax: 0.10.0
libtpu: 0.0.40
codegen_flags: <defaults>
</compile_context>

<pallas_src>
import functools

import jax
import jax.numpy as jnp
from jax.experimental import pallas as pl
from jax.experimental.pallas import tpu as pltpu

INFINITY_NUMBER = 1e12   # word.INFINITY_NUMBER
LEAKY_SLOPE = 0.2


def _leaky_relu(x):
    return jnp.where(x >= 0, x, LEAKY_SLOPE * x)


def _softmax_lastdim(x):
    m = jnp.max(x, axis=-1, keepdims=True)
    e = jnp.exp(x - m)
    return e / jnp.sum(e, axis=-1, keepdims=True)


def two_attention_gat_kernel(
    x_ref, rel_ref, keep_ref,
    wv_ref, bv_ref, wsr_ref, bsr_ref, wsrc_ref, wtgt_ref, wf_ref, bf_ref,
    out_ref, attn_ref,
    *, num_heads, d_v, seq_len, attn_pad,
):
    L = seq_len
    H = num_heads
    dv = d_v
    D = H * dv

    x = x_ref[...]                                                        # (L, D)

    # Value projection + GAT src/tgt scores for all heads: three MXU matmuls.
    val = jnp.dot(x, wv_ref[...], preferred_element_type=jnp.float32) + bv_ref[...]   # (L, H*dv)
    s_src = jnp.dot(val, wsrc_ref[...], preferred_element_type=jnp.float32)           # (L, H)
    s_tgt = jnp.dot(val, wtgt_ref[...], preferred_element_type=jnp.float32)           # (L, H)
    s_srcT = s_src.T                                                                    # (H, L)

    # Relation scores for all heads from ONE tall matmul in the natural
    # (query*key, D) layout: (L*L, D) @ (D, H) -> (L*L, H).
    r_all = _leaky_relu(
        jnp.dot(rel_ref[...], wsr_ref[...], preferred_element_type=jnp.float32)
        + bsr_ref[...])                                                                 # (L*L, H)

    # Re-layout (i*L + j, h) -> (h*L + i, j): one 2-D transpose, then static
    # lane slices concatenated along sublanes (no lane-splitting reshape).
    r_allT = r_all.T                                                                    # (H, L*L)
    scores_r = jnp.concatenate(
        [r_allT[h:h + 1, i * L:(i + 1) * L] for h in range(H) for i in range(L)],
        axis=0)                                                                         # (H*L, L)

    # Fused mask: 1.0 = key not padded AND edge present, 0.0 otherwise.
    keep = keep_ref[...]                                                                # (H*L, L)
    neg = (keep - 1.0) * INFINITY_NUMBER                                                # 0 / -INF additive mask

    # Relation attention for ALL heads with a single masked softmax.
    attn_r_all = _softmax_lastdim(scores_r + neg) * keep                                # (H*L, L)

    av_parts, ar_parts, agg_v, agg_r = [], [], [], []
    for h in range(H):                                                    # static, H = 4
        keep_h = keep[h * L:(h + 1) * L, :]
        neg_h = neg[h * L:(h + 1) * L, :]
        # GAT value scores for head h: target column + source row broadcast add.
        sv = _leaky_relu(s_tgt[:, h:h + 1] + s_srcT[h:h + 1, :])                        # (L, L)
        av = _softmax_lastdim(sv + neg_h) * keep_h                                      # (L, L)
        ar = attn_r_all[h * L:(h + 1) * L, :]                                           # (L, L)
        v_h = val[:, h * dv:(h + 1) * dv]                                               # (L, dv)

        av_parts.append(av)
        ar_parts.append(ar)
        # Both branches aggregate the *value* projection (matches the module).
        agg_v.append(jnp.dot(av, v_h, preferred_element_type=jnp.float32))
        agg_r.append(jnp.dot(ar, v_h, preferred_element_type=jnp.float32))

    # One lane-dense store of all attention probabilities, padded to a 128 multiple.
    attn_parts = av_parts + ar_parts
    if attn_pad:
        attn_parts.append(jnp.zeros((L, attn_pad), jnp.float32))
    attn_ref[...] = jnp.concatenate(attn_parts, axis=1)

    # cat(out_value, out_relation) kept as an SSA value (no scratch round trip),
    # then final projection + residual.
    agg = jnp.concatenate(agg_v + agg_r, axis=1)                                        # (L, 2D)
    final = jnp.dot(agg, wf_ref[...], preferred_element_type=jnp.float32) + bf_ref[...] + x
    out_ref[...] = final.astype(out_ref.dtype)


def two_attention_gat_forward(inp, relation_inp, mask, adj_mask, params, num_heads):
    B, L, D = inp.shape
    H = num_heads
    dv = D // H
    Hd = H * dv
    HL = H * L
    attn_w = ((2 * HL + 127) // 128) * 128           # lane-dense (>=128) packed attn width
    attn_pad = attn_w - 2 * HL

    # ---- tiny wrapper-side weight fusion (pure XLA, done once) ---------------
    w_src, w_tgt, w_rel = params["w_src"], params["w_tgt"], params["w_rel"]     # (H, dv)
    eyeH = jnp.eye(H, dtype=jnp.float32)
    # selector matrices (H*dv, H): column h carries w_*[h] in rows h*dv:(h+1)*dv
    Wsrc_sel = jnp.einsum("hk,hg->hkg", w_src, eyeH).reshape(Hd, H)
    Wtgt_sel = jnp.einsum("hk,hg->hkg", w_tgt, eyeH).reshape(Hd, H)
    # Fuse the relation Linear with w_rel: score_r = rel_inp @ W_score_rel + b_score_rel
    Wr, br = params["Wr"], params["br"]
    W_score_rel = jnp.einsum("dhk,hk->dh", Wr.reshape(D, H, dv), w_rel)         # (D, H)
    b_score_rel = jnp.einsum("hk,hk->h", br.reshape(H, dv), w_rel).reshape(1, H)

    # ---- layout plumbing: reshapes only (no big-tensor transposes) -----------
    inp2d = inp.reshape(B * L, D)
    rel2d = relation_inp.reshape(B * L * L, D)                      # natural layout
    # Fused keep mask: key not padded AND adjacency edge present.
    keep = jnp.logical_and(adj_mask != 0.0, (mask <= 0.0)[:, None, :, :])
    keep2d = keep.astype(jnp.float32).reshape(B * H * L, L)

    kernel = functools.partial(
        two_attention_gat_kernel, num_heads=H, d_v=dv, seq_len=L, attn_pad=attn_pad)

    in_specs = [
        pl.BlockSpec((L, D), lambda b: (b, 0)),                     # inp2d
        pl.BlockSpec((L * L, D), lambda b: (b, 0)),                 # rel2d (natural)
        pl.BlockSpec((H * L, L), lambda b: (b, 0)),                 # keep2d (fused mask)
        pl.BlockSpec((D, Hd), lambda b: (0, 0)),                    # Wv
        pl.BlockSpec((1, Hd), lambda b: (0, 0)),                    # bv
        pl.BlockSpec((D, H), lambda b: (0, 0)),                     # W_score_rel
        pl.BlockSpec((1, H), lambda b: (0, 0)),                     # b_score_rel
        pl.BlockSpec((Hd, H), lambda b: (0, 0)),                    # Wsrc_sel
        pl.BlockSpec((Hd, H), lambda b: (0, 0)),                    # Wtgt_sel
        pl.BlockSpec((2 * D, D), lambda b: (0, 0)),                 # Wf
        pl.BlockSpec((1, D), lambda b: (0, 0)),                     # bf
    ]
    out_specs = (
        pl.BlockSpec((L, D), lambda b: (b, 0)),                     # final output
        pl.BlockSpec((L, attn_w), lambda b: (b, 0)),                # packed attention
    )
    out_shape = (
        jax.ShapeDtypeStruct((B * L, D), jnp.float32),
        jax.ShapeDtypeStruct((B * L, attn_w), jnp.float32),
    )

    out2d, attn2d = pl.pallas_call(
        kernel,
        grid=(B,),                                                   # >=2 steps -> DMA pipelines
        in_specs=in_specs,
        out_specs=out_specs,
        out_shape=out_shape,
        compiler_params=pltpu.CompilerParams(
            dimension_semantics=("parallel",),
            vmem_limit_bytes=32 * 1024 * 1024),
    )(inp2d, rel2d, keep2d,
      params["Wv"], params["bv"], W_score_rel, b_score_rel,
      Wsrc_sel, Wtgt_sel, params["Wf"], params["bf"])

    final = out2d.reshape(B, L, D)
    attn = attn2d[:, :2 * HL].reshape(B, L, 2, H, L)
    attn_value = attn[:, :, 0].transpose(0, 2, 1, 3)       # (B, H, L, L)
    attn_relation = attn[:, :, 1].transpose(0, 2, 1, 3)    # (B, H, L, L)
    # Returned stacked (callers can slice per head lazily).
    return final, attn_value, attn_relation


def reference_forward(inp, relation_inp, mask, adj_mask, params, num_heads):
    """Pure-JAX literal translation of the PyTorch forward (for verification)."""
    B, L, D = inp.shape
    dv = D // num_heads
    val_flat = inp @ params["Wv"] + params["bv"]                               # (B,L,H*dv)
    value = val_flat.reshape(B, L, num_heads, dv).transpose(0, 2, 1, 3)        # (B,H,L,dv)
    rel = (relation_inp @ params["Wr"] + params["br"]).reshape(B, L, L, num_heads, dv)
    s_src = jnp.einsum("bhjd,hd->bhj", value, params["w_src"])
    s_tgt = jnp.einsum("bhid,hd->bhi", value, params["w_tgt"])
    scores_v = _leaky_relu(s_tgt[:, :, :, None] + s_src[:, :, None, :])        # (B,H,L,L)
    scores_r = _leaky_relu(jnp.einsum("bijhd,hd->bhij", rel, params["w_rel"]))
    m = (mask > 0)[:, None]                                                     # (B,1,L,L)
    a0 = adj_mask == 0
    scores_v = jnp.where(a0, -INFINITY_NUMBER, jnp.where(m, -INFINITY_NUMBER, scores_v))
    scores_r = jnp.where(a0, -INFINITY_NUMBER, jnp.where(m, -INFINITY_NUMBER, scores_r))
    attn_v = jax.nn.softmax(scores_v, axis=-1)
    attn_r = jax.nn.softmax(scores_r, axis=-1)
    attn_v = jnp.where(a0, 0.0, jnp.where(m, 0.0, attn_v))
    attn_r = jnp.where(a0, 0.0, jnp.where(m, 0.0, attn_r))
    out_v = jnp.einsum("bhij,bhjd->bhid", attn_v, value).transpose(0, 2, 1, 3).reshape(B, L, D)
    out_r = jnp.einsum("bhij,bhjd->bhid", attn_r, value).transpose(0, 2, 1, 3).reshape(B, L, D)
    final = jnp.concatenate([out_v, out_r], -1) @ params["Wf"] + params["bf"] + inp
    return final, attn_v, attn_r


def _xavier_uniform(key, shape, fan_in, fan_out):
    bound = (6.0 / (fan_in + fan_out)) ** 0.5
    return jax.random.uniform(key, shape, jnp.float32, -bound, bound)


if __name__ == "__main__":
    B, L, D, H = 2, 8, 32, 4
    dv = D // H

    key = jax.random.PRNGKey(0)
    keys = jax.random.split(key, 12)

    params = {
        "Wv": _xavier_uniform(keys[0], (D, H * dv), D, H * dv),
        "bv": jax.random.uniform(keys[1], (1, H * dv), jnp.float32, -0.1, 0.1),
        "Wr": _xavier_uniform(keys[2], (D, H * dv), D, H * dv),
        "br": jax.random.uniform(keys[3], (1, H * dv), jnp.float32, -0.1, 0.1),
        "w_src": _xavier_uniform(keys[4], (H, dv), H * dv, H * dv),
        "w_tgt": _xavier_uniform(keys[5], (H, dv), H * dv, H * dv),
        "w_rel": _xavier_uniform(keys[6], (H, dv), H * dv, H * dv),
        "Wf": _xavier_uniform(keys[7], (2 * D, D), 2 * D, D),
        "bf": jax.random.uniform(keys[8], (1, D), jnp.float32, -0.1, 0.1),
    }

    inp = jax.random.normal(keys[9], (B, L, D), jnp.float32)
    relation_inp = jax.random.normal(keys[10], (B, L, L, D), jnp.float32)

    # padding mask: batch 0 full length, batch 1 has 2 padded key positions.
    lengths = jnp.array([L, L - 2])
    key_pos = jnp.arange(L)
    mask = jnp.broadcast_to(
        (key_pos[None, None, :] >= lengths[:, None, None]), (B, L, L)
    ).astype(jnp.float32)
    adj_mask = (jax.random.uniform(keys[11], (B, H, L, L)) < 0.7).astype(jnp.float32)

    final, attn_v, attn_r = two_attention_gat_forward(
        inp, relation_inp, mask, adj_mask, params, H)
    jax.block_until_ready(final)

    # verify against the pure-JAX reference
    ref_final, ref_av, ref_ar = reference_forward(
        inp, relation_inp, mask, adj_mask, params, H)
    assert jnp.allclose(final, ref_final, rtol=1e-4, atol=1e-4), "final mismatch"
    assert jnp.allclose(attn_v, ref_av, rtol=1e-4, atol=1e-4), "attn_value mismatch"
    assert jnp.allclose(attn_r, ref_ar, rtol=1e-4, atol=1e-4), "attn_relation mismatch"

    # TODO(synk): dropout (p=0 here), normalized=True renormalization, the
    # activation hook, and the relative-position / deprel embedding branches are
    # config-disabled and not implemented in the kernel.
    print("KERNEL_OK")
</pallas_src>

<mosaic_0001>
module attributes {stable_mosaic.version = 11 : i64} {
  func.func @two_attention_gat_kernel(%arg0: i32, %arg1: memref<8x32xf32, #tpu.memory_space<vmem>>, %arg2: memref<64x32xf32, #tpu.memory_space<vmem>>, %arg3: memref<32x8xf32, #tpu.memory_space<vmem>>, %arg4: memref<32x32xf32, #tpu.memory_space<vmem>>, %arg5: memref<1x32xf32, #tpu.memory_space<vmem>>, %arg6: memref<32x4xf32, #tpu.memory_space<vmem>>, %arg7: memref<1x4xf32, #tpu.memory_space<vmem>>, %arg8: memref<32x4xf32, #tpu.memory_space<vmem>>, %arg9: memref<32x4xf32, #tpu.memory_space<vmem>>, %arg10: memref<64x32xf32, #tpu.memory_space<vmem>>, %arg11: memref<1x32xf32, #tpu.memory_space<vmem>>, %arg12: memref<8x32xf32, #tpu.memory_space<vmem>>, %arg13: memref<8x128xf32, #tpu.memory_space<vmem>>) attributes {dimension_semantics = [#tpu.dimension_semantics<parallel>], iteration_bounds = array<i64: 2>, scalar_prefetch = 0 : i64, scratch_operands = 0 : i64, tpu.core_type = #tpu.core_type<tc>, window_params = [{transform_indices = @transform_0, window_bounds = array<i64: 8, 32>}, {transform_indices = @transform_1, window_bounds = array<i64: 64, 32>}, {transform_indices = @transform_2, window_bounds = array<i64: 32, 8>}, {pipeline_mode = #tpu.pipeline_mode<synchronous>, transform_indices = @transform_3, window_bounds = array<i64: 32, 32>}, {pipeline_mode = #tpu.pipeline_mode<synchronous>, transform_indices = @transform_4, window_bounds = array<i64: 1, 32>}, {pipeline_mode = #tpu.pipeline_mode<synchronous>, transform_indices = @transform_5, window_bounds = array<i64: 32, 4>}, {pipeline_mode = #tpu.pipeline_mode<synchronous>, transform_indices = @transform_6, window_bounds = array<i64: 1, 4>}, {pipeline_mode = #tpu.pipeline_mode<synchronous>, transform_indices = @transform_7, window_bounds = array<i64: 32, 4>}, {pipeline_mode = #tpu.pipeline_mode<synchronous>, transform_indices = @transform_8, window_bounds = array<i64: 32, 4>}, {pipeline_mode = #tpu.pipeline_mode<synchronous>, transform_indices = @transform_9, window_bounds = array<i64: 64, 32>}, {pipeline_mode = #tpu.pipeline_mode<synchronous>, transform_indices = @transform_10, window_bounds = array<i64: 1, 32>}, {transform_indices = @transform_11, window_bounds = array<i64: 8, 32>}, {transform_indices = @transform_12, window_bounds = array<i64: 8, 128>}]} {
    %c0 = arith.constant 0 : index
    %c0_0 = arith.constant 0 : index
    %0 = vector.load %arg1[%c0, %c0_0] : memref<8x32xf32, #tpu.memory_space<vmem>>, vector<8x32xf32>
    %c0_1 = arith.constant 0 : index
    %c0_2 = arith.constant 0 : index
    %1 = vector.load %arg4[%c0_1, %c0_2] : memref<32x32xf32, #tpu.memory_space<vmem>>, vector<32x32xf32>
    %cst = arith.constant dense<0.000000e+00> : vector<8x32xf32>
    %2 = tpu.matmul %0, %1, %cst {dimension_numbers = #tpu.dot_dimension_numbers<[1], [0], [0], [1], [0, 0, 1, 1], [], []>} : vector<8x32xf32>, vector<32x32xf32>, vector<8x32xf32> -> vector<8x32xf32>
    %c0_3 = arith.constant 0 : index
    %c0_4 = arith.constant 0 : index
    %3 = vector.load %arg5[%c0_3, %c0_4] : memref<1x32xf32, #tpu.memory_space<vmem>>, vector<1x32xf32>
    %4 = vector.broadcast %3 : vector<1x32xf32> to vector<8x32xf32>
    %5 = arith.addf %2, %4 : vector<8x32xf32>
    %c0_5 = arith.constant 0 : index
    %c0_6 = arith.constant 0 : index
    %6 = vector.load %arg8[%c0_5, %c0_6] : memref<32x4xf32, #tpu.memory_space<vmem>>, vector<32x4xf32>
    %cst_7 = arith.constant dense<0.000000e+00> : vector<8x4xf32>
    %7 = tpu.matmul %5, %6, %cst_7 {dimension_numbers = #tpu.dot_dimension_numbers<[1], [0], [0], [1], [0, 0, 1, 1], [], []>} : vector<8x32xf32>, vector<32x4xf32>, vector<8x4xf32> -> vector<8x4xf32>
    %c0_8 = arith.constant 0 : index
    %c0_9 = arith.constant 0 : index
    %8 = vector.load %arg9[%c0_8, %c0_9] : memref<32x4xf32, #tpu.memory_space<vmem>>, vector<32x4xf32>
    %cst_10 = arith.constant dense<0.000000e+00> : vector<8x4xf32>
    %9 = tpu.matmul %5, %8, %cst_10 {dimension_numbers = #tpu.dot_dimension_numbers<[1], [0], [0], [1], [0, 0, 1, 1], [], []>} : vector<8x32xf32>, vector<32x4xf32>, vector<8x4xf32> -> vector<8x4xf32>
    %10 = tpu.transpose %7, [1, 0] : vector<8x4xf32> -> vector<4x8xf32>
    %c0_11 = arith.constant 0 : index
    %c0_12 = arith.constant 0 : index
    %11 = vector.load %arg2[%c0_11, %c0_12] : memref<64x32xf32, #tpu.memory_space<vmem>>, vector<64x32xf32>
    %c0_13 = arith.constant 0 : index
    %c0_14 = arith.constant 0 : index
    %12 = vector.load %arg6[%c0_13, %c0_14] : memref<32x4xf32, #tpu.memory_space<vmem>>, vector<32x4xf32>
    %cst_15 = arith.constant dense<0.000000e+00> : vector<64x4xf32>
    %13 = tpu.matmul %11, %12, %cst_15 {dimension_numbers = #tpu.dot_dimension_numbers<[1], [0], [0], [1], [0, 0, 1, 1], [], []>} : vector<64x32xf32>, vector<32x4xf32>, vector<64x4xf32> -> vector<64x4xf32>
    %c0_16 = arith.constant 0 : index
    %c0_17 = arith.constant 0 : index
    %14 = vector.load %arg7[%c0_16, %c0_17] : memref<1x4xf32, #tpu.memory_space<vmem>>, vector<1x4xf32>
    %15 = vector.broadcast %14 : vector<1x4xf32> to vector<64x4xf32>
    %16 = arith.addf %13, %15 : vector<64x4xf32>
    %cst_18 = arith.constant 0.000000e+00 : f32
    %17 = vector.broadcast %cst_18 : f32 to vector<64x4xf32>
    %18 = arith.cmpf oge, %16, %17 : vector<64x4xf32>
    %cst_19 = arith.constant 2.000000e-01 : f32
    %19 = vector.broadcast %cst_19 : f32 to vector<64x4xf32>
    %20 = arith.mulf %19, %16 : vector<64x4xf32>
    %21 = arith.select %18, %16, %20 : vector<64x4xi1>, vector<64x4xf32>
    %22 = tpu.transpose %21, [1, 0] : vector<64x4xf32> -> vector<4x64xf32>
    %23 = vector.extract_strided_slice %22 {offsets = [0, 0], sizes = [1, 8], strides = [1, 1]} : vector<4x64xf32> to vector<1x8xf32>
    %24 = vector.extract_strided_slice %22 {offsets = [0, 8], sizes = [1, 8], strides = [1, 1]} : vector<4x64xf32> to vector<1x8xf32>
    %25 = vector.extract_strided_slice %22 {offsets = [0, 16], sizes = [1, 8], strides = [1, 1]} : vector<4x64xf32> to vector<1x8xf32>
    %26 = vector.extract_strided_slice %22 {offsets = [0, 24], sizes = [1, 8], strides = [1, 1]} : vector<4x64xf32> to vector<1x8xf32>
    %27 = vector.extract_strided_slice %22 {offsets = [0, 32], sizes = [1, 8], strides = [1, 1]} : vector<4x64xf32> to vector<1x8xf32>
    %28 = vector.extract_strided_slice %22 {offsets = [0, 40], sizes = [1, 8], strides = [1, 1]} : vector<4x64xf32> to vector<1x8xf32>
    %29 = vector.extract_strided_slice %22 {offsets = [0, 48], sizes = [1, 8], strides = [1, 1]} : vector<4x64xf32> to vector<1x8xf32>
    %30 = vector.extract_strided_slice %22 {offsets = [0, 56], sizes = [1, 8], strides = [1, 1]} : vector<4x64xf32> to vector<1x8xf32>
    %31 = vector.extract_strided_slice %22 {offsets = [1, 0], sizes = [1, 8], strides = [1, 1]} : vector<4x64xf32> to vector<1x8xf32>
    %32 = vector.extract_strided_slice %22 {offsets = [1, 8], sizes = [1, 8], strides = [1, 1]} : vector<4x64xf32> to vector<1x8xf32>
    %33 = vector.extract_strided_slice %22 {offsets = [1, 16], sizes = [1, 8], strides = [1, 1]} : vector<4x64xf32> to vector<1x8xf32>
    %34 = vector.extract_strided_slice %22 {offsets = [1, 24], sizes = [1, 8], strides = [1, 1]} : vector<4x64xf32> to vector<1x8xf32>
    %35 = vector.extract_strided_slice %22 {offsets = [1, 32], sizes = [1, 8], strides = [1, 1]} : vector<4x64xf32> to vector<1x8xf32>
    %36 = vector.extract_strided_slice %22 {offsets = [1, 40], sizes = [1, 8], strides = [1, 1]} : vector<4x64xf32> to vector<1x8xf32>
    %37 = vector.extract_strided_slice %22 {offsets = [1, 48], sizes = [1, 8], strides = [1, 1]} : vector<4x64xf32> to vector<1x8xf32>
    %38 = vector.extract_strided_slice %22 {offsets = [1, 56], sizes = [1, 8], strides = [1, 1]} : vector<4x64xf32> to vector<1x8xf32>
    %39 = vector.extract_strided_slice %22 {offsets = [2, 0], sizes = [1, 8], strides = [1, 1]} : vector<4x64xf32> to vector<1x8xf32>
    %40 = vector.extract_strided_slice %22 {offsets = [2, 8], sizes = [1, 8], strides = [1, 1]} : vector<4x64xf32> to vector<1x8xf32>
    %41 = vector.extract_strided_slice %22 {offsets = [2, 16], sizes = [1, 8], strides = [1, 1]} : vector<4x64xf32> to vector<1x8xf32>
    %42 = vector.extract_strided_slice %22 {offsets = [2, 24], sizes = [1, 8], strides = [1, 1]} : vector<4x64xf32> to vector<1x8xf32>
    %43 = vector.extract_strided_slice %22 {offsets = [2, 32], sizes = [1, 8], strides = [1, 1]} : vector<4x64xf32> to vector<1x8xf32>
    %44 = vector.extract_strided_slice %22 {offsets = [2, 40], sizes = [1, 8], strides = [1, 1]} : vector<4x64xf32> to vector<1x8xf32>
    %45 = vector.extract_strided_slice %22 {offsets = [2, 48], sizes = [1, 8], strides = [1, 1]} : vector<4x64xf32> to vector<1x8xf32>
    %46 = vector.extract_strided_slice %22 {offsets = [2, 56], sizes = [1, 8], strides = [1, 1]} : vector<4x64xf32> to vector<1x8xf32>
    %47 = vector.extract_strided_slice %22 {offsets = [3, 0], sizes = [1, 8], strides = [1, 1]} : vector<4x64xf32> to vector<1x8xf32>
    %48 = vector.extract_strided_slice %22 {offsets = [3, 8], sizes = [1, 8], strides = [1, 1]} : vector<4x64xf32> to vector<1x8xf32>
    %49 = vector.extract_strided_slice %22 {offsets = [3, 16], sizes = [1, 8], strides = [1, 1]} : vector<4x64xf32> to vector<1x8xf32>
    %50 = vector.extract_strided_slice %22 {offsets = [3, 24], sizes = [1, 8], strides = [1, 1]} : vector<4x64xf32> to vector<1x8xf32>
    %51 = vector.extract_strided_slice %22 {offsets = [3, 32], sizes = [1, 8], strides = [1, 1]} : vector<4x64xf32> to vector<1x8xf32>
    %52 = vector.extract_strided_slice %22 {offsets = [3, 40], sizes = [1, 8], strides = [1, 1]} : vector<4x64xf32> to vector<1x8xf32>
    %53 = vector.extract_strided_slice %22 {offsets = [3, 48], sizes = [1, 8], strides = [1, 1]} : vector<4x64xf32> to vector<1x8xf32>
    %54 = vector.extract_strided_slice %22 {offsets = [3, 56], sizes = [1, 8], strides = [1, 1]} : vector<4x64xf32> to vector<1x8xf32>
    %55 = tpu.concatenate %23, %24, %25, %26, %27, %28, %29, %30, %31, %32, %33, %34, %35, %36, %37, %38 in 0 : vector<1x8xf32>, vector<1x8xf32>, vector<1x8xf32>, vector<1x8xf32>, vector<1x8xf32>, vector<1x8xf32>, vector<1x8xf32>, vector<1x8xf32>, vector<1x8xf32>, vector<1x8xf32>, vector<1x8xf32>, vector<1x8xf32>, vector<1x8xf32>, vector<1x8xf32>, vector<1x8xf32>, vector<1x8xf32> -> vector<16x8xf32>
    %56 = tpu.concatenate %39, %40, %41, %42, %43, %44, %45, %46, %47, %48, %49, %50, %51, %52, %53, %54 in 0 : vector<1x8xf32>, vector<1x8xf32>, vector<1x8xf32>, vector<1x8xf32>, vector<1x8xf32>, vector<1x8xf32>, vector<1x8xf32>, vector<1x8xf32>, vector<1x8xf32>, vector<1x8xf32>, vector<1x8xf32>, vector<1x8xf32>, vector<1x8xf32>, vector<1x8xf32>, vector<1x8xf32>, vector<1x8xf32> -> vector<16x8xf32>
    %57 = tpu.concatenate %55, %56 in 0 : vector<16x8xf32>, vector<16x8xf32> -> vector<32x8xf32>
    %c0_20 = arith.constant 0 : index
    %c0_21 = arith.constant 0 : index
    %58 = vector.load %arg3[%c0_20, %c0_21] : memref<32x8xf32, #tpu.memory_space<vmem>>, vector<32x8xf32>
    %cst_22 = arith.constant 1.000000e+00 : f32
    %59 = vector.broadcast %cst_22 : f32 to vector<32x8xf32>
    %60 = arith.subf %58, %59 : vector<32x8xf32>
    %cst_23 = arith.constant 9.99999995E+11 : f32
    %61 = vector.broadcast %cst_23 : f32 to vector<32x8xf32>
    %62 = arith.mulf %60, %61 : vector<32x8xf32>
    %63 = arith.addf %57, %62 : vector<32x8xf32>
    %cst_24 = arith.constant dense<0xFF800000> : vector<32xf32>
    %64 = vector.multi_reduction <maximumf>, %63, %cst_24 [1] : vector<32x8xf32> to vector<32xf32>
    %65 = vector.shape_cast %64 : vector<32xf32> to vector<32x1xf32>
    %66 = vector.broadcast %65 : vector<32x1xf32> to vector<32x8xf32>
    %67 = arith.subf %63, %66 : vector<32x8xf32>
    %68 = math.exp %67 : vector<32x8xf32>
    %cst_25 = arith.constant dense<0.000000e+00> : vector<32xf32>
    %69 = vector.multi_reduction <add>, %68, %cst_25 [1] : vector<32x8xf32> to vector<32xf32>
    %70 = vector.shape_cast %69 : vector<32xf32> to vector<32x1xf32>
    %71 = vector.broadcast %70 : vector<32x1xf32> to vector<32x8xf32>
    %72 = arith.divf %68, %71 : vector<32x8xf32>
    %73 = arith.mulf %72, %58 : vector<32x8xf32>
    %74 = vector.extract_strided_slice %58 {offsets = [0, 0], sizes = [8, 8], strides = [1, 1]} : vector<32x8xf32> to vector<8x8xf32>
    %75 = vector.extract_strided_slice %62 {offsets = [0, 0], sizes = [8, 8], strides = [1, 1]} : vector<32x8xf32> to vector<8x8xf32>
    %76 = vector.extract_strided_slice %9 {offsets = [0, 0], sizes = [8, 1], strides = [1, 1]} : vector<8x4xf32> to vector<8x1xf32>
    %77 = vector.extract_strided_slice %10 {offsets = [0, 0], sizes = [1, 8], strides = [1, 1]} : vector<4x8xf32> to vector<1x8xf32>
    %78 = vector.broadcast %76 : vector<8x1xf32> to vector<8x8xf32>
    %79 = vector.broadcast %77 : vector<1x8xf32> to vector<8x8xf32>
    %80 = arith.addf %78, %79 : vector<8x8xf32>
    %cst_26 = arith.constant 0.000000e+00 : f32
    %81 = vector.broadcast %cst_26 : f32 to vector<8x8xf32>
    %82 = arith.cmpf oge, %80, %81 : vector<8x8xf32>
    %cst_27 = arith.constant 2.000000e-01 : f32
    %83 = vector.broadcast %cst_27 : f32 to vector<8x8xf32>
    %84 = arith.mulf %83, %80 : vector<8x8xf32>
    %85 = arith.select %82, %80, %84 : vector<8x8xi1>, vector<8x8xf32>
    %86 = arith.addf %85, %75 : vector<8x8xf32>
    %cst_28 = arith.constant dense<0xFF800000> : vector<8xf32>
    %87 = vector.multi_reduction <maximumf>, %86, %cst_28 [1] : vector<8x8xf32> to vector<8xf32>
    %88 = vector.shape_cast %87 : vector<8xf32> to vector<8x1xf32>
    %89 = vector.broadcast %88 : vector<8x1xf32> to vector<8x8xf32>
    %90 = arith.subf %86, %89 : vector<8x8xf32>
    %91 = math.exp %90 : vector<8x8xf32>
    %cst_29 = arith.constant dense<0.000000e+00> : vector<8xf32>
    %92 = vector.multi_reduction <add>, %91, %cst_29 [1] : vector<8x8xf32> to vector<8xf32>
    %93 = vector.shape_cast %92 : vector<8xf32> to vector<8x1xf32>
    %94 = vector.broadcast %93 : vector<8x1xf32> to vector<8x8xf32>
    %95 = arith.divf %91, %94 : vector<8x8xf32>
    %96 = arith.mulf %95, %74 : vector<8x8xf32>
    %97 = vector.extract_strided_slice %73 {offsets = [0, 0], sizes = [8, 8], strides = [1, 1]} : vector<32x8xf32> to vector<8x8xf32>
    %98 = vector.extract_strided_slice %5 {offsets = [0, 0], sizes = [8, 8], strides = [1, 1]} : vector<8x32xf32> to vector<8x8xf32>
    %cst_30 = arith.constant dense<0.000000e+00> : vector<8x8xf32>
    %99 = tpu.matmul %96, %98, %cst_30 {dimension_numbers = #tpu.dot_dimension_numbers<[1], [0], [0], [1], [0, 0, 1, 1], [], []>} : vector<8x8xf32>, vector<8x8xf32>, vector<8x8xf32> -> vector<8x8xf32>
    %cst_31 = arith.constant dense<0.000000e+00> : vector<8x8xf32>
    %100 = tpu.matmul %97, %98, %cst_31 {dimension_numbers = #tpu.dot_dimension_numbers<[1], [0], [0], [1], [0, 0, 1, 1], [], []>} : vector<8x8xf32>, vector<8x8xf32>, vector<8x8xf32> -> vector<8x8xf32>
    %101 = vector.extract_strided_slice %58 {offsets = [8, 0], sizes = [8, 8], strides = [1, 1]} : vector<32x8xf32> to vector<8x8xf32>
    %102 = vector.extract_strided_slice %62 {offsets = [8, 0], sizes = [8, 8], strides = [1, 1]} : vector<32x8xf32> to vector<8x8xf32>
    %103 = vector.extract_strided_slice %9 {offsets = [0, 1], sizes = [8, 1], strides = [1, 1]} : vector<8x4xf32> to vector<8x1xf32>
    %104 = vector.extract_strided_slice %10 {offsets = [1, 0], sizes = [1, 8], strides = [1, 1]} : vector<4x8xf32> to vector<1x8xf32>
    %105 = vector.broadcast %103 : vector<8x1xf32> to vector<8x8xf32>
    %106 = vector.broadcast %104 : vector<1x8xf32> to vector<8x8xf32>
    %107 = arith.addf %105, %106 : vector<8x8xf32>
    %cst_32 = arith.constant 0.000000e+00 : f32
    %108 = vector.broadcast %cst_32 : f32 to vector<8x8xf32>
    %109 = arith.cmpf oge, %107, %108 : vector<8x8xf32>
    %cst_33 = arith.constant 2.000000e-01 : f32
    %110 = vector.broadcast %cst_33 : f32 to vector<8x8xf32>
    %111 = arith.mulf %110, %107 : vector<8x8xf32>
    %112 = arith.select %109, %107, %111 : vector<8x8xi1>, vector<8x8xf32>
    %113 = arith.addf %112, %102 : vector<8x8xf32>
    %cst_34 = arith.constant dense<0xFF800000> : vector<8xf32>
    %114 = vector.multi_reduction <maximumf>, %113, %cst_34 [1] : vector<8x8xf32> to vector<8xf32>
    %115 = vector.shape_cast %114 : vector<8xf32> to vector<8x1xf32>
    %116 = vector.broadcast %115 : vector<8x1xf32> to vector<8x8xf32>
    %117 = arith.subf %113, %116 : vector<8x8xf32>
    %118 = math.exp %117 : vector<8x8xf32>
    %cst_35 = arith.constant dense<0.000000e+00> : vector<8xf32>
    %119 = vector.multi_reduction <add>, %118, %cst_35 [1] : vector<8x8xf32> to vector<8xf32>
    %120 = vector.shape_cast %119 : vector<8xf32> to vector<8x1xf32>
    %121 = vector.broadcast %120 : vector<8x1xf32> to vector<8x8xf32>
    %122 = arith.divf %118, %121 : vector<8x8xf32>
    %123 = arith.mulf %122, %101 : vector<8x8xf32>
    %124 = vector.extract_strided_slice %73 {offsets = [8, 0], sizes = [8, 8], strides = [1, 1]} : vector<32x8xf32> to vector<8x8xf32>
    %125 = vector.extract_strided_slice %5 {offsets = [0, 8], sizes = [8, 8], strides = [1, 1]} : vector<8x32xf32> to vector<8x8xf32>
    %cst_36 = arith.constant dense<0.000000e+00> : vector<8x8xf32>
    %126 = tpu.matmul %123, %125, %cst_36 {dimension_numbers = #tpu.dot_dimension_numbers<[1], [0], [0], [1], [0, 0, 1, 1], [], []>} : vector<8x8xf32>, vector<8x8xf32>, vector<8x8xf32> -> vector<8x8xf32>
    %cst_37 = arith.constant dense<0.000000e+00> : vector<8x8xf32>
    %127 = tpu.matmul %124, %125, %cst_37 {dimension_numbers = #tpu.dot_dimension_numbers<[1], [0], [0], [1], [0, 0, 1, 1], [], []>} : vector<8x8xf32>, vector<8x8xf32>, vector<8x8xf32> -> vector<8x8xf32>
    %128 = vector.extract_strided_slice %58 {offsets = [16, 0], sizes = [8, 8], strides = [1, 1]} : vector<32x8xf32> to vector<8x8xf32>
    %129 = vector.extract_strided_slice %62 {offsets = [16, 0], sizes = [8, 8], strides = [1, 1]} : vector<32x8xf32> to vector<8x8xf32>
    %130 = vector.extract_strided_slice %9 {offsets = [0, 2], sizes = [8, 1], strides = [1, 1]} : vector<8x4xf32> to vector<8x1xf32>
    %131 = vector.extract_strided_slice %10 {offsets = [2, 0], sizes = [1, 8], strides = [1, 1]} : vector<4x8xf32> to vector<1x8xf32>
    %132 = vector.broadcast %130 : vector<8x1xf32> to vector<8x8xf32>
    %133 = vector.broadcast %131 : vector<1x8xf32> to vector<8x8xf32>
    %134 = arith.addf %132, %133 : vector<8x8xf32>
    %cst_38 = arith.constant 0.000000e+00 : f32
    %135 = vector.broadcast %cst_38 : f32 to vector<8x8xf32>
    %136 = arith.cmpf oge, %134, %135 : vector<8x8xf32>
    %cst_39 = arith.constant 2.000000e-01 : f32
    %137 = vector.broadcast %cst_39 : f32 to vector<8x8xf32>
    %138 = arith.mulf %137, %134 : vector<8x8xf32>
    %139 = arith.select %136, %134, %138 : vector<8x8xi1>, vector<8x8xf32>
    %140 = arith.addf %139, %129 : vector<8x8xf32>
    %cst_40 = arith.constant dense<0xFF800000> : vector<8xf32>
    %141 = vector.multi_reduction <maximumf>, %140, %cst_40 [1] : vector<8x8xf32> to vector<8xf32>
    %142 = vector.shape_cast %141 : vector<8xf32> to vector<8x1xf32>
    %143 = vector.broadcast %142 : vector<8x1xf32> to vector<8x8xf32>
    %144 = arith.subf %140, %143 : vector<8x8xf32>
    %145 = math.exp %144 : vector<8x8xf32>
    %cst_41 = arith.constant dense<0.000000e+00> : vector<8xf32>
    %146 = vector.multi_reduction <add>, %145, %cst_41 [1] : vector<8x8xf32> to vector<8xf32>
    %147 = vector.shape_cast %146 : vector<8xf32> to vector<8x1xf32>
    %148 = vector.broadcast %147 : vector<8x1xf32> to vector<8x8xf32>
    %149 = arith.divf %145, %148 : vector<8x8xf32>
    %150 = arith.mulf %149, %128 : vector<8x8xf32>
    %151 = vector.extract_strided_slice %73 {offsets = [16, 0], sizes = [8, 8], strides = [1, 1]} : vector<32x8xf32> to vector<8x8xf32>
    %152 = vector.extract_strided_slice %5 {offsets = [0, 16], sizes = [8, 8], strides = [1, 1]} : vector<8x32xf32> to vector<8x8xf32>
    %cst_42 = arith.constant dense<0.000000e+00> : vector<8x8xf32>
    %153 = tpu.matmul %150, %152, %cst_42 {dimension_numbers = #tpu.dot_dimension_numbers<[1], [0], [0], [1], [0, 0, 1, 1], [], []>} : vector<8x8xf32>, vector<8x8xf32>, vector<8x8xf32> -> vector<8x8xf32>
    %cst_43 = arith.constant dense<0.000000e+00> : vector<8x8xf32>
    %154 = tpu.matmul %151, %152, %cst_43 {dimension_numbers = #tpu.dot_dimension_numbers<[1], [0], [0], [1], [0, 0, 1, 1], [], []>} : vector<8x8xf32>, vector<8x8xf32>, vector<8x8xf32> -> vector<8x8xf32>
    %155 = vector.extract_strided_slice %58 {offsets = [24, 0], sizes = [8, 8], strides = [1, 1]} : vector<32x8xf32> to vector<8x8xf32>
    %156 = vector.extract_strided_slice %62 {offsets = [24, 0], sizes = [8, 8], strides = [1, 1]} : vector<32x8xf32> to vector<8x8xf32>
    %157 = vector.extract_strided_slice %9 {offsets = [0, 3], sizes = [8, 1], strides = [1, 1]} : vector<8x4xf32> to vector<8x1xf32>
    %158 = vector.extract_strided_slice %10 {offsets = [3, 0], sizes = [1, 8], strides = [1, 1]} : vector<4x8xf32> to vector<1x8xf32>
    %159 = vector.broadcast %157 : vector<8x1xf32> to vector<8x8xf32>
    %160 = vector.broadcast %158 : vector<1x8xf32> to vector<8x8xf32>
    %161 = arith.addf %159, %160 : vector<8x8xf32>
    %cst_44 = arith.constant 0.000000e+00 : f32
    %162 = vector.broadcast %cst_44 : f32 to vector<8x8xf32>
    %163 = arith.cmpf oge, %161, %162 : vector<8x8xf32>
    %cst_45 = arith.constant 2.000000e-01 : f32
    %164 = vector.broadcast %cst_45 : f32 to vector<8x8xf32>
    %165 = arith.mulf %164, %161 : vector<8x8xf32>
    %166 = arith.select %163, %161, %165 : vector<8x8xi1>, vector<8x8xf32>
    %167 = arith.addf %166, %156 : vector<8x8xf32>
    %cst_46 = arith.constant dense<0xFF800000> : vector<8xf32>
    %168 = vector.multi_reduction <maximumf>, %167, %cst_46 [1] : vector<8x8xf32> to vector<8xf32>
    %169 = vector.shape_cast %168 : vector<8xf32> to vector<8x1xf32>
    %170 = vector.broadcast %169 : vector<8x1xf32> to vector<8x8xf32>
    %171 = arith.subf %167, %170 : vector<8x8xf32>
    %172 = math.exp %171 : vector<8x8xf32>
    %cst_47 = arith.constant dense<0.000000e+00> : vector<8xf32>
    %173 = vector.multi_reduction <add>, %172, %cst_47 [1] : vector<8x8xf32> to vector<8xf32>
    %174 = vector.shape_cast %173 : vector<8xf32> to vector<8x1xf32>
    %175 = vector.broadcast %174 : vector<8x1xf32> to vector<8x8xf32>
    %176 = arith.divf %172, %175 : vector<8x8xf32>
    %177 = arith.mulf %176, %155 : vector<8x8xf32>
    %178 = vector.extract_strided_slice %73 {offsets = [24, 0], sizes = [8, 8], strides = [1, 1]} : vector<32x8xf32> to vector<8x8xf32>
    %179 = vector.extract_strided_slice %5 {offsets = [0, 24], sizes = [8, 8], strides = [1, 1]} : vector<8x32xf32> to vector<8x8xf32>
    %cst_48 = arith.constant dense<0.000000e+00> : vector<8x8xf32>
    %180 = tpu.matmul %177, %179, %cst_48 {dimension_numbers = #tpu.dot_dimension_numbers<[1], [0], [0], [1], [0, 0, 1, 1], [], []>} : vector<8x8xf32>, vector<8x8xf32>, vector<8x8xf32> -> vector<8x8xf32>
    %cst_49 = arith.constant dense<0.000000e+00> : vector<8x8xf32>
    %181 = tpu.matmul %178, %179, %cst_49 {dimension_numbers = #tpu.dot_dimension_numbers<[1], [0], [0], [1], [0, 0, 1, 1], [], []>} : vector<8x8xf32>, vector<8x8xf32>, vector<8x8xf32> -> vector<8x8xf32>
    %cst_50 = arith.constant 0.000000e+00 : f32
    %182 = vector.broadcast %cst_50 : f32 to vector<8x64xf32>
    %183 = tpu.concatenate %96, %123, %150, %177, %97, %124, %151, %178, %182 in 1 : vector<8x8xf32>, vector<8x8xf32>, vector<8x8xf32>, vector<8x8xf32>, vector<8x8xf32>, vector<8x8xf32>, vector<8x8xf32>, vector<8x8xf32>, vector<8x64xf32> -> vector<8x128xf32>
    %c0_51 = arith.constant 0 : index
    %c0_52 = arith.constant 0 : index
    %184 = vector.load %arg13[%c0_51, %c0_52] : memref<8x128xf32, #tpu.memory_space<vmem>>, vector<8x128xf32>
    tpu.vector_store %arg13[%c0_51, %c0_52], %183 {strides = array<i32>} : memref<8x128xf32, #tpu.memory_space<vmem>>, vector<8x128xf32>,
    %185 = tpu.concatenate %99, %126, %153, %180, %100, %127, %154, %181 in 1 : vector<8x8xf32>, vector<8x8xf32>, vector<8x8xf32>, vector<8x8xf32>, vector<8x8xf32>, vector<8x8xf32>, vector<8x8xf32>, vector<8x8xf32> -> vector<8x64xf32>
    %c0_53 = arith.constant 0 : index
    %c0_54 = arith.constant 0 : index
    %186 = vector.load %arg10[%c0_53, %c0_54] : memref<64x32xf32, #tpu.memory_space<vmem>>, vector<64x32xf32>
    %cst_55 = arith.constant dense<0.000000e+00> : vector<8x32xf32>
    %187 = tpu.matmul %185, %186, %cst_55 {dimension_numbers = #tpu.dot_dimension_numbers<[1], [0], [0], [1], [0, 0, 1, 1], [], []>} : vector<8x64xf32>, vector<64x32xf32>, vector<8x32xf32> -> vector<8x32xf32>
    %c0_56 = arith.constant 0 : index
    %c0_57 = arith.constant 0 : index
    %188 = vector.load %arg11[%c0_56, %c0_57] : memref<1x32xf32, #tpu.memory_space<vmem>>, vector<1x32xf32>
    %189 = vector.broadcast %188 : vector<1x32xf32> to vector<8x32xf32>
    %190 = arith.addf %187, %189 : vector<8x32xf32>
    %191 = arith.addf %190, %0 : vector<8x32xf32>
    %c0_58 = arith.constant 0 : index
    %c0_59 = arith.constant 0 : index
    %192 = vector.load %arg12[%c0_58, %c0_59] : memref<8x32xf32, #tpu.memory_space<vmem>>, vector<8x32xf32>
    tpu.vector_store %arg12[%c0_58, %c0_59], %191 {strides = array<i32>} : memref<8x32xf32, #tpu.memory_space<vmem>>, vector<8x32xf32>,
    return
  }
  func.func @transform_0(%arg0: i32) -> (i32, i32) {
    %c0_i32 = arith.constant 0 : i32
    %c0_i32_0 = arith.constant 0 : i32
    return %arg0, %c0_i32 : i32, i32
  }
  func.func @transform_1(%arg0: i32) -> (i32, i32) {
    %c0_i32 = arith.constant 0 : i32
    %c0_i32_0 = arith.constant 0 : i32
    return %arg0, %c0_i32 : i32, i32
  }
  func.func @transform_2(%arg0: i32) -> (i32, i32) {
    %c0_i32 = arith.constant 0 : i32
    %c0_i32_0 = arith.constant 0 : i32
    return %arg0, %c0_i32 : i32, i32
  }
  func.func @transform_3(%arg0: i32) -> (i32, i32) {
    %c0_i32 = arith.constant 0 : i32
    %c0_i32_0 = arith.constant 0 : i32
    %c0_i32_1 = arith.constant 0 : i32
    return %c0_i32, %c0_i32_0 : i32, i32
  }
  func.func @transform_4(%arg0: i32) -> (i32, i32) {
    %c0_i32 = arith.constant 0 : i32
    %c0_i32_0 = arith.constant 0 : i32
    %c0_i32_1 = arith.constant 0 : i32
    return %c0_i32, %c0_i32_0 : i32, i32
  }
  func.func @transform_5(%arg0: i32) -> (i32, i32) {
    %c0_i32 = arith.constant 0 : i32
    %c0_i32_0 = arith.constant 0 : i32
    %c0_i32_1 = arith.constant 0 : i32
    return %c0_i32, %c0_i32_0 : i32, i32
  }
  func.func @transform_6(%arg0: i32) -> (i32, i32) {
    %c0_i32 = arith.constant 0 : i32
    %c0_i32_0 = arith.constant 0 : i32
    %c0_i32_1 = arith.constant 0 : i32
    return %c0_i32, %c0_i32_0 : i32, i32
  }
  func.func @transform_7(%arg0: i32) -> (i32, i32) {
    %c0_i32 = arith.constant 0 : i32
    %c0_i32_0 = arith.constant 0 : i32
    %c0_i32_1 = arith.constant 0 : i32
    return %c0_i32, %c0_i32_0 : i32, i32
  }
  func.func @transform_8(%arg0: i32) -> (i32, i32) {
    %c0_i32 = arith.constant 0 : i32
    %c0_i32_0 = arith.constant 0 : i32
    %c0_i32_1 = arith.constant 0 : i32
    return %c0_i32, %c0_i32_0 : i32, i32
  }
  func.func @transform_9(%arg0: i32) -> (i32, i32) {
    %c0_i32 = arith.constant 0 : i32
    %c0_i32_0 = arith.constant 0 : i32
    %c0_i32_1 = arith.constant 0 : i32
    return %c0_i32, %c0_i32_0 : i32, i32
  }
  func.func @transform_10(%arg0: i32) -> (i32, i32) {
    %c0_i32 = arith.constant 0 : i32
    %c0_i32_0 = arith.constant 0 : i32
    %c0_i32_1 = arith.constant 0 : i32
    return %c0_i32, %c0_i32_0 : i32, i32
  }
  func.func @transform_11(%arg0: i32) -> (i32, i32) {
    %c0_i32 = arith.constant 0 : i32
    %c0_i32_0 = arith.constant 0 : i32
    return %arg0, %c0_i32 : i32, i32
  }
  func.func @transform_12(%arg0: i32) -> (i32, i32) {
    %c0_i32 = arith.constant 0 : i32
    %c0_i32_0 = arith.constant 0 : i32
    return %arg0, %c0_i32 : i32, i32
  }
}

</mosaic_0001>

<bundles_post_ra>
// kernel: tpu_custom_call.1
= control target key start
LH: loop header
LB: loop body
LE: loop exit
PB: predicated region body
PF: predicated region fallthrough
CT: control target
= control target key end

     0   :  { %s3122_s0 = inlined_call_operand.vmem [shape: f32[16,32], index: 0, kind: input, shape index: {}]   ;;  %s3123_s1 = inlined_call_operand.vmem [shape: f32[128,32], index: 1, kind: input, shape index: {}]   ;;  %s3124_s2 = inlined_call_operand.vmem [shape: f32[64,8], index: 2, kind: input, shape index: {}]   ;;  %s3125_s3 = inlined_call_operand.vmem [shape: f32[32,32], index: 3, kind: input, shape index: {}]   ;;  %s3126_s4 = inlined_call_operand.vmem [shape: f32[1,32], index: 4, kind: input, shape index: {}]   ;;  %s3127_s5 = inlined_call_operand.vmem [shape: f32[32,4], index: 5, kind: input, shape index: {}]   ;;  %s3128_s6 = inlined_call_operand.vmem [shape: f32[1,4], index: 6, kind: input, shape index: {}]   ;;  %s3129_s7 = inlined_call_operand.vmem [shape: f32[32,4], index: 7, kind: input, shape index: {}]   ;;  %s3130_s8 = inlined_call_operand.vmem [shape: f32[32,4], index: 8, kind: input, shape index: {}]   ;;  %s3131_s9 = inlined_call_operand.vmem [shape: f32[64,32], index: 9, kind: input, shape index: {}]   ;;  %s3132_s10 = inlined_call_operand.vmem [shape: f32[1,32], index: 10, kind: input, shape index: {}]   ;;  %s3133_s11 = inlined_call_operand.hbm [shape: f32[16,32], index: 11, kind: output, shape index: {0}]   ;;  %s3134_s12 = inlined_call_operand.hbm [shape: f32[16,128], index: 12, kind: output, shape index: {1}]  }
   0x1   :  { %3139 = sst [smem:[#allocation9_spill]] %s3122_s0 }
   0x2   :  { %3140 = sst [smem:[#allocation10_spill]] %s3123_s1 }
   0x3   :  { %3141 = sst [smem:[#allocation11_spill]] %s3124_s2 }
   0x4   :  { %3142 = sst [smem:[#allocation12_spill]] %s3125_s3 }
   0x5   :  { %3143 = sst [smem:[#allocation13_spill]] %s3126_s4 }
   0x6   :  { %18 = vsyncpa [#allocation3], 0 }
   0x7   :  { %20 = vsyncpa [#allocation3 + $0x1], 0 }
   0x8   :  { %21 = vsyncpa [#allocation5], 0 }
   0x9   :  { %23 = vsyncpa [#allocation5 + $0x1], 0  ;;  %s2623_s21 = smov 0   ;;  %s2625_s22 = smov 0  }
   0xa   :  { %s2627_s23 = smov 0   ;;  %s2629_s24 = smov 0  }
   0xb LB: > { %s2644_s25 = sadd.s32 4294967295, %s2534_s24   ;;  %s2134_s26 = sadd.s32 4294967294, %s2534_s24   ;;  %s2534_s24 = sphi %s2629_s24, %s3160_s24   ;;  %s2530_s23 = sphi %s2627_s23, %s3159_s23   ;;  %s2526_s22 = sphi %s2625_s22, %s3158_s22   ;;  %s2522_s21 = sphi %s2623_s21, %s3157_s21  }
   0xc   : > { %s2648_s27 = sadd.s32 1, %s2534_s24   ;;  %s282_s28 = sadd.s32 1, %s2530_s23 }
   0xd   : > { %s279_s29 = ssub.s32 %s2534_s24, %s2648_s27  ;;  %p292_p0 = scmp.ne.s32.totalorder %s2530_s23, %s2526_s22 }
   0xe   : > { %p280_p1 = scmp.eq.s32.totalorder %s279_s29, 0  ;;  %p293_p2 = scmp.eq.s32.totalorder %s2644_s25, 1 }
   0xf   : > { %p298_p3 = scmp.ne.s32.totalorder %s2526_s22, %s2522_s21  ;;  %p299_p4 = scmp.eq.s32.totalorder %s2134_s26, 1 }
  0x10   : > { %s2659_s30 = scalar_select %p280_p1, %s2530_s23, %s282_s28  }
  0x11   : > { %p2661_p5 = por %p293_p2, %p292_p0  ;;  %p2665_p6 = por %p299_p4, %p298_p3 }
  0x12   : > { %3144 = sst [smem:[#allocation8_spill]] %s2659_s30  ;;  %p2137_p7 = scmp.ge.s32.totalorder %s2534_s24, 1 }
  0x13   : > { %p392_p8 = scmp.lt.s32.totalorder %s2534_s24, 3 }
  0x15   : > { %p393_p9 = pnand %p2137_p7, %p392_p8 }
  0x16   : > { %s3147_s3 = sld [smem:[#allocation12_spill]] (!%p393_p9)  ;;  %s2141_s26 = sshll.u32 (!%p393_p9), %s2644_s25, 3 }
  0x17   : > { %396 = sbr.rel (%p393_p9) target bundleno = 1460 (0x5b4), region = 64  ;;  %p453_p10 = scmp.lt.s32.totalorder (!%p393_p9), %s2141_s26, 15 }
  0x18   : > { %p448_p11 = scmp.lt.s32.totalorder (!%p393_p9), %s2644_s25, 1  ;;  %s3148_s1 = sld [smem:[#allocation10_spill]] (!%p393_p9) }
  0x19   : > { %s3149_s0 = sld [smem:[#allocation9_spill]] (!%p393_p9)  ;;  %s3136_s17 = smov (!%p393_p9), 104  }
  0x1a   : > { %s3150_s4 = sld [smem:[#allocation13_spill]] (!%p393_p9)  ;;  %s3135_s18 = smov (!%p393_p9), 112  }
  0x1b   : > { %s2544_s20 = smov (!%p393_p9), 80   ;;  %s2545_s29 = smov (!%p393_p9), 72  }
  0x1c   : > { %v744_v0 = vld [vmem:[%s3127_s5 + $0x18] sm:$0xff]  ;;  %v743_v2 = vld [vmem:[%s3127_s5 + $0x10] sm:$0xff]  ;;  %v2536_v3 = vmov 0.0   ;;  %v742_v5 = vld [vmem:[%s3127_s5 + $0x8] sm:$0xff]  ;;  %s3162_s26 = smov (!%p453_p10, %s2141_s26), 15  ;;  %vm476_vm0 = vcmask 261120  }
  0x1d   : > { %v468_v1 = vld [vmem:[%s3147_s3 + $0x18] sm:$0xff]  ;;  %2230 = vmatprep.subr.mxu0 %v2536_v3  ;;  %2263 = vmatprep.subr.mxu1 %v744_v0  ;;  %v467_v4 = vld [vmem:[%s3147_s3 + $0x10] sm:$0xff]  ;;  %v466_v6 = vld [vmem:[%s3147_s3 + $0x8] sm:$0xff]  ;;  %s449_s28 = scalar_select %p448_p11, %s2644_s25, 1  ;;  %vm2537_vm1 = vmmov 0   ;;  %v2538_v63 = vmov 0  }
  0x1e   : > { %2231 = vmatpush3.msra.mxu0 %v468_v1  ;;  %2264 = vmatpush3.msra.mxu1 %v744_v0  ;;  %v741_v7 = vld [vmem:[%s3127_s5] sm:$0xff]  ;;  %s2142_s16 = sshll.u32 %s3162_s26, 3  ;;  %v553_v13 = vld [vmem:[%s3129_s7 + $0x18] sm:$0xff]  ;;  %v552_v15 = vld [vmem:[%s3129_s7 + $0x10] sm:$0xff]  ;;  %v2539_v0 = vmov 2   ;;  %s2143_s15 = sshll.u32 %s2644_s25, 2 }
  0x1f   : > { %2232 = vmatprep.subr.mxu0 %v2536_v3  ;;  %2265 = vmatprep.subr.mxu1 %v743_v2  ;;  %v465_v8 = vld [vmem:[%s3147_s3] sm:$0xff]  ;;  %s2704_s30 = scalar_lea.vmem %s3148_s1, %s2142_s16  ;;  %s2140_s19 = sshll.u32 %s449_s28, 3  ;;  %v551_v17 = vld [vmem:[%s3129_s7 + $0x8] sm:$0xff]  ;;  %v630_v28 = vld [vmem:[%s3130_s8 + $0x18] sm:$0xff]  ;;  %vm990_vm10 = vcmask 1041408   ;;  %vm988_vm11 = vcmask 1040384  }
  0x20   : > { %2233 = vmatpush3.msra.mxu0 %v467_v4  ;;  %2266 = vmatpush3.msra.mxu1 %v743_v2  ;;  %v733_v9 = vld [vmem:[%s2704_s30] sm:$0xff]  ;;  %s2711_s26 = scalar_lea.vmem %s3149_s0, %s2140_s19  ;;  %v734_v10 = vld [vmem:[%s2704_s30 + $0x8] sm:$0xff]  ;;  %v735_v12 = vld [vmem:[%s2704_s30 + $0x10] sm:$0xff]  ;;  %s2543_s19 = smov 88   ;;  %vm992_vm12 = vcmask 1042432   ;;  %vm994_vm13 = vcmask 1043456  }
  0x21   : > { %2234 = vmatprep.subr.mxu0 %v2536_v3  ;;  %2267 = vmatprep.subr.mxu1 %v742_v5  ;;  %v464_v11 = vld [vmem:[%s2711_s26] sm:$0xff]  ;;  %v736_v14 = vld [vmem:[%s2704_s30 + $0x18] sm:$0xff]  ;;  %v738_v18 = vld [vmem:[%s2704_s30 + $0x28] sm:$0xff]  ;;  %s2546_s28 = smov 96   ;;  %p459_p12 = scmp.lt.s32.totalorder %s2143_s15, 7  ;;  %vm996_vm14 = vcmask 1044480  }
  0x22   : > { %2235 = vmatpush3.msra.mxu0 %v466_v6  ;;  %2268 = vmatpush3.msra.mxu1 %v742_v5  ;;  %v737_v16 = vld [vmem:[%s2704_s30 + $0x20] sm:$0xff]  ;;  %v739_v19 = vld [vmem:[%s2704_s30 + $0x30] sm:$0xff]  ;;  %v740_v20 = vld [vmem:[%s2704_s30 + $0x38] sm:$0xff]  ;;  %s2540_s30 = smov 120   ;;  %s3151_s2 = sld [smem:[#allocation11_spill]]  ;;  %vm998_vm15 = vcmask 1045504  }
  0x23   : > { %2236 = vmatprep.subr.mxu0 %v2536_v3  ;;  %2269 = vmatprep.subr.mxu1 %v741_v7  ;;  %v550_v21 = vld [vmem:[%s3129_s7] sm:$0xff]  ;;  %v629_v32 = vld [vmem:[%s3130_s8 + $0x10] sm:$0xff]  ;;  %v628_v34 = vld [vmem:[%s3130_s8 + $0x8] sm:$0xff]  ;;  %s3164_s15 = smov (!%p459_p12, %s2143_s15), 7  ;;  %s2556_s1 = smov [#allocation4]  }
  0x24   : > { %2237 = vmatpush3.msra.mxu0 %v465_v8  ;;  %2238 = vmatprep.mubr.msk.f32.mxu0 %vm2537_vm1, %v2536_v3  ;;  %v2145_v22 = vld [vmem:[%s3150_s4] ss:$0 sm:$0xff]  ;;  %s2144_s16 = sshll.u32 %s3164_s15, 3  ;;  %s2555_s15 = smov 56  }
  0x25   : > { %2270 = vmatpush3.msra.mxu1 %v741_v7  ;;  %2271 = vmatprep.mubr.msk.f32.mxu1 %vm476_vm0, %v733_v9  ;;  %v2149_v25 = vld [vmem:[%s3128_s6] ss:$0 sm:$0xff] }
  0x26   : > { %2239 = vmatmul.mubr.msk.f32.vlgmr.msra.gmra.mxu0 %vm476_vm0, %v464_v11  ;;  %2272 = vmatmul.mubr.msk.f32.vlgmr.msra.gmra.mxu1 %vm476_vm0, %v734_v10  ;;  %v627_v39 = vld [vmem:[%s3130_s8] sm:$0xff] }
  0x27   : > { %2274 = vmatprep.mubr.msk.f32.mxu1 %vm476_vm0, %v735_v12  ;;  %2241 = vmatprep.subr.mxu0 %v2536_v3 }
  0x28   : > { %2242 = vmatpush3.msra.mxu0 %v553_v13  ;;  %2249 = vmatprep.mubr.msk.f32.mxu0 %vm2537_vm1, %v2536_v3 }
  0x29   : > { %2243 = vmatprep.subr.mxu0 %v2536_v3  ;;  %2303 = vmatprep.subr.mxu1 %v2536_v3 }
  0x2a   : > { %2275 = vmatmul.mubr.msk.f32.gmra.mxu1 %vm476_vm0, %v736_v14  ;;  %2244 = vmatpush3.msra.mxu0 %v552_v15  ;;  %v2547_v14 = vmov 1   ;;  %v2548_v15 = vmov 3  }
  0x2b   : > { %2277 = vmatprep.mubr.msk.f32.mxu1 %vm476_vm0, %v737_v16  ;;  %2245 = vmatprep.subr.mxu0 %v2536_v3 }
  0x2c   : > { %2246 = vmatpush3.msra.mxu0 %v551_v17  ;;  %2406 = vset.pattern.permute.xlu1 %v2538_v63 }
  0x2d   : > { %2247 = vmatprep.subr.mxu0 %v2536_v3 }
  0x2e   : > { %2278 = vmatmul.mubr.msk.f32.gmra.mxu1 %vm476_vm0, %v738_v18  ;;  %2248 = vmatpush3.msra.mxu0 %v550_v21 }
  0x2f   : > { %2280 = vmatprep.mubr.msk.f32.mxu1 %vm476_vm0, %v739_v19  ;;  %2252 = vmatprep.subr.mxu0 %v2536_v3 }
  0x32   : > { %2281 = vmatmul.mubr.msk.f32.gmra.mxu1 %vm476_vm0, %v740_v20 }
  0x33   : > { %2305 = vmatprep.mubr.msk.f32.mxu1 %vm2537_vm1, %v2536_v3 }
  0xe6   : > { %v546_v23 = vpop.f32.mrf.mxu0  ;;  %v2273_v24 = vpop.f32.mrf.mxu1 }
  0xe7   : > { %v2760_v26 = vadd.f32 %v2145_v22, %v546_v23  ;;  %v848_v27 = vadd.f32 %v2273_v24, %v2149_v25 }
  0xe8   : > { %v2240_v29 = vpop.f32.mrf.mxu0  ;;  %v842_v30 = vpop.f32.mrf.mxu1 }
  0xe9   : > { %v843_v31 = vadd.f32 %v2149_v25, %v842_v30  ;;  %2250 = vmatmul.mubr.msk.f32.vlgmr.msra.gmra.mxu0 %vm476_vm0, %v2760_v26  ;;  %v890_v36 = vmul.f32 0.2, %v848_v27  ;;  %vm882_vm3 = vcmp.ge.f32.partialorder %v848_v27, 0.0 }
  0xea   : > { %2253 = vmatpush3.msra.mxu0 %v630_v28  ;;  %v2276_v33 = vpop.f32.mrf.mxu1  ;;  %2260 = vmatprep.mubr.msk.f32.mxu0 %vm2537_vm1, %v2536_v3 }
  0xeb   : > { %2254 = vmatprep.subr.mxu0 %v2536_v3  ;;  %vm881_vm2 = vcmp.ge.f32.partialorder %v843_v31, 0.0  ;;  %v889_v35 = vmul.f32 0.2, %v843_v31  ;;  %v858_v42 = vadd.f32 %v2276_v33, %v2149_v25  ;;  %v898_v43 = vsel %vm882_vm3, %v848_v27, %v890_v36 }
  0xec   : > { %2255 = vmatpush3.msra.mxu0 %v629_v32  ;;  %v852_v37 = vpop.f32.mrf.mxu1  ;;  %vm1083_vm3 = vcmask 64512  }
  0xed   : > { %2256 = vmatprep.subr.mxu0 %v2536_v3  ;;  %v897_v38 = vsel %vm881_vm2, %v843_v31, %v889_v35  ;;  %v853_v40 = vadd.f32 %v2149_v25, %v852_v37  ;;  %v892_v48 = vmul.f32 0.2, %v858_v42  ;;  %vm884_vm5 = vcmp.ge.f32.partialorder %v858_v42, 0.0 }
  0xee   : > { %2257 = vmatpush3.msra.mxu0 %v628_v34  ;;  %905 = vxpose.xlu0.b32.start [1/8] (short) (narrow) %v897_v38, 8  ;;  %v2279_v41 = vpop.f32.mrf.mxu1  ;;  %vm1000_vm2 = vcmask 1046528  }
  0xef   : > { %2258 = vmatprep.subr.mxu0 %v2536_v3  ;;  %v891_v44 = vmul.f32 0.2, %v853_v40  ;;  %vm883_vm4 = vcmp.ge.f32.partialorder %v853_v40, 0.0  ;;  %v868_v50 = vadd.f32 %v2279_v41, %v2149_v25  ;;  %v900_v51 = vsel %vm884_vm5, %v858_v42, %v892_v48 }
  0xf0   : > { %2259 = vmatpush3.msra.mxu0 %v627_v39  ;;  %v862_v45 = vpop.f32.mrf.mxu1 }
  0xf1   : > { %2261 = vmatmul.mubr.msk.f32.vlgmr.msra.gmra.mxu0 %vm476_vm0, %v2760_v26  ;;  %2283 = vmatprep.subr.mxu0 %v2536_v3  ;;  %v899_v46 = vsel %vm883_vm4, %v853_v40, %v891_v44  ;;  %v863_v47 = vadd.f32 %v2149_v25, %v862_v45  ;;  %v894_v56 = vmul.f32 0.2, %v868_v50  ;;  %vm886_vm7 = vcmp.ge.f32.partialorder %v868_v50, 0.0 }
  0xf2   : > { %2284 = vmatpush3.msra.mxu0 %v2760_v26  ;;  %906 = vxpose.xlu0.b32.cont [2/8] (short) (narrow) %v898_v43, 8  ;;  %v2282_v49 = vpop.f32.mrf.mxu1 }
  0xf3   : > { %2285 = vmatprep.mubr.msk.f32.mxu0 %vm2537_vm1, %v2536_v3  ;;  %2288 = vmatprep.subr.mxu0 %v2536_v3  ;;  %v893_v52 = vmul.f32 0.2, %v863_v47  ;;  %vm885_vm6 = vcmp.ge.f32.partialorder %v863_v47, 0.0  ;;  %v878_v57 = vadd.f32 %v2282_v49, %v2149_v25  ;;  %v902_v58 = vsel %vm886_vm7, %v868_v50, %v894_v56 }
  0xf4   : > { %v872_v53 = vpop.f32.mrf.mxu1 }
  0xf5   : > { %v901_v54 = vsel %vm885_vm6, %v863_v47, %v893_v52  ;;  %v873_v55 = vadd.f32 %v2149_v25, %v872_v53  ;;  %v896_v61 = vmul.f32 0.2, %v878_v57  ;;  %vm888_vm9 = vcmp.ge.f32.partialorder %v878_v57, 0.0 }
  0xf6   : > { %907 = vxpose.xlu0.b32.cont [3/8] (short) (narrow) %v899_v46, 8 }
  0xf7   : > { %v895_v59 = vmul.f32 0.2, %v873_v55  ;;  %vm887_vm8 = vcmp.ge.f32.partialorder %v873_v55, 0.0  ;;  %v904_v62 = vsel %vm888_vm9, %v878_v57, %v896_v61  ;;  %vm1853_vm9 = vcmask 326656  }
  0xf9   : > { %v903_v60 = vsel %vm887_vm8, %v873_v55, %v895_v59  ;;  %vm1850_vm8 = vcmask 195584  }
  0xfa   : > { %908 = vxpose.xlu0.b32.cont [4/8] (short) (narrow) %v900_v51, 8 }
  0xfe   : > { %909 = vxpose.xlu0.b32.cont [5/8] (short) (narrow) %v901_v54, 8 }
 0x102   : > { %910 = vxpose.xlu0.b32.cont [6/8] (short) (narrow) %v902_v58, 8 }
 0x106   : > { %911 = vxpose.xlu0.b32.cont [7/8] (short) (narrow) %v903_v60, 8 }
 0x10a   : > { %912 = vxpose.xlu0.b32.end [8/8] (short) (narrow) %v904_v62, 8 }
 0x133   : > { %2408 = vset.pattern.permute.xlu0 %v2539_v0 }
 0x16a   : > { %v2788_v1 = vpop.trf.xlu0 }
 0x16b   : > { %967 = vrot.lane.b32.xlu1 %v2788_v1, %s2540_s30  ;;  %v938_v2 = vrot.slane %v2788_v1, 7  ;;  %v946_v4 = vrot.slane %v2788_v1, 5  ;;  %v942_v5 = vrot.slane %v2788_v1, 6  ;;  %v950_v6 = vrot.slane %v2788_v1, 4 }
 0x16c   : > { %v2804_v7 = vrot.slane %v2788_v1, 3  ;;  %v2812_v8 = vrot.slane %v2788_v1, 2  ;;  %v2817_v9 = vrot.slane %v2788_v1, 1 }
 0x16d   : > { %1016 = vrot.lane.b32.xlu0 %v938_v2, %s3136_s17 }
 0x16f   : > { %1013 = vrot.lane.b32.xlu1 %v2788_v1, %s3135_s18 }
 0x171   : > { %1022 = vrot.lane.b32.xlu0 %v946_v4, %s2543_s19 }
 0x173   : > { %939 = vrot.lane.b32.xlu1 %v938_v2, %s2540_s30 }
 0x175   : > { %1025 = vrot.lane.b32.xlu0 %v950_v6, %s2544_s20 }
 0x177   : > { %943 = vrot.lane.b32.xlu1 %v942_v5, %s3135_s18 }
 0x179   : > { %1028 = vrot.lane.b32.xlu0 %v2804_v7, %s2545_s29 }
 0x17b   : > { %947 = vrot.lane.b32.xlu1 %v946_v4, %s3136_s17 }
 0x17f   : > { %951 = vrot.lane.b32.xlu1 %v950_v6, %s2546_s28 }
 0x183   : > { %955 = vrot.lane.b32.xlu1 %v2804_v7, %s2543_s19 }
 0x187   : > { %959 = vrot.lane.b32.xlu1 %v2812_v8, %s2544_s20 }
 0x18b   : > { %963 = vrot.lane.b32.xlu1 %v2817_v9, %s2545_s29 }
 0x18f   : > { %970 = vrot.lane.b32.xlu1 %v938_v2, %s3135_s18 }
 0x193   : > { %973 = vrot.lane.b32.xlu1 %v942_v5, %s3136_s17 }
 0x197   : > { %976 = vrot.lane.b32.xlu1 %v946_v4, %s2546_s28 }
 0x19b   : > { %979 = vrot.lane.b32.xlu1 %v950_v6, %s2543_s19 }
 0x19f   : > { %1010 = vrot.lane.b32.xlu1 %v2817_v9, %s2540_s30 }
 0x1a3   : > { %982 = vrot.lane.b32.xlu1 %v2804_v7, %s2544_s20 }
 0x1a7   : > { %985 = vrot.lane.b32.xlu1 %v2812_v8, %s2545_s29 }
 0x1a9   : > { %v623_v10 = vpop.f32.mrf.mxu0 }
 0x1ab   : > { %1019 = vrot.lane.b32.xlu1 %v942_v5, %s2546_s28  ;;  %v2251_v11 = vpop.f32.mrf.mxu0 }
 0x1b1   : > { %v697_v12 = vpop.f32.mrf.mxu0 }
 0x1b2   : > { %1479 = vperm.xlu0 %2408, %v697_v12   ;;  %1134 = vperm.xlu1 %2406, %v697_v12  }
 0x1b3   : > { %v2262_v13 = vpop.f32.mrf.mxu0 }
 0x1b6   : > { %1041 = vrot.lane.b32.xlu0 %v938_v2, %s2546_s28  ;;  %1032 = vrot.lane.b32.xlu1 %v2812_v8, %s2540_s30 }
 0x1b7   : > { %2407 = vset.pattern.permute.xlu1 %v2547_v14 }
 0x1ba   : > { %1305 = vperm.xlu1 %2407, %v697_v12  }
 0x1be   : > { %1035 = vrot.lane.b32.xlu1 %v2817_v9, %s3135_s18  ;;  %s2551_s18 = smov 8  }
 0x1bf   : > { %2409 = vset.pattern.permute.xlu1 %v2548_v15 }
 0x1c2   : > { %1653 = vperm.xlu1 %2409, %v697_v12  }
 0x1c6   : > { %1038 = vrot.lane.b32.xlu1 %v2788_v1, %s3136_s17  ;;  %s2843_s17 = scalar_lea.vmem %s3151_s2, %s2144_s16  ;;  %s2549_s16 = smov 16  }
 0x1c7   : > { %v2846_v22 = vld [vmem:[%s2843_s17] sm:$0xff]  ;;  %v2865_v42 = vld [vmem:[%s2843_s17 + $0x8] sm:$0xff]  ;;  %s2448_s2 = sshll.u32 %s2556_s1, 4  ;;  %s2449_s2 = int_to_ptr.vmem [resolvable:$false] %s2448_s2 }
 0x1c8   : > { %v2158_v24 = vadd.f32 -1.0, %v2846_v22  ;;  %v2159_v46 = vadd.f32 -1.0, %v2865_v42  ;;  %s2450_s3 = scalar_lea.vmem %s2449_s2, 256 }
 0x1ca   : > { %1044 = vrot.lane.b32.xlu1 %v942_v5, %s2543_s19  ;;  %v2854_v31 = vmul.f32 1e+12, %v2158_v24  ;;  %v1076_v52 = vmul.f32 1e+12, %v2159_v46  ;;  %s2552_s19 = smov 32  }
 0x1ce   : > { %1047 = vrot.lane.b32.xlu1 %v946_v4, %s2544_s20  ;;  %v1137_v4 = vlaneseq  ;;  %s2553_s20 = smov 40  }
 0x1d2   : > { %1050 = vrot.lane.b32.xlu1 %v950_v6, %s2545_s29  ;;  %s2554_s29 = smov 48  }
 0x1d4   : > { %701 = vxpose.xlu0.b32.start.end [1/1] (short) (narrow) %v623_v10, 8 }
 0x1dd   : > { %v968_v16 = vpop.permute.xlu1 %967 }
 0x1de   : > { %v1002_v47 = vsel %vm988_vm11, %v2817_v9, %v968_v16  ;;  %v2886_v16 = vld [vmem:[%s2843_s17 + $0x10] sm:$0xff] }
 0x1df   : > { %v1017_v59 = vpop.permute.xlu0 %1016  ;;  %v2160_v24 = vadd.f32 -1.0, %v2886_v16 }
 0x1e1   : > { %v1014_v17 = vpop.permute.xlu1 %1013 }
 0x1e3   : > { %v1023_v62 = vpop.permute.xlu0 %1022 }
 0x1e5   : > { %v940_v18 = vpop.permute.xlu1 %939 }
 0x1e6   : > { %v989_v25 = vsel %vm988_vm11, %v2788_v1, %v940_v18 }
 0x1e7   : > { %v1026_v0 = vpop.permute.xlu0 %1025 }
 0x1e9   : > { %v944_v19 = vpop.permute.xlu1 %943 }
 0x1ea   : > { %v991_v27 = vsel %vm990_vm10, %v989_v25, %v944_v19 }
 0x1eb   : > { %v1029_v2 = vpop.permute.xlu0 %1028 }
 0x1ed   : > { %v948_v20 = vpop.permute.xlu1 %947 }
 0x1ee   : > { %v993_v29 = vsel %vm992_vm12, %v991_v27, %v948_v20 }
 0x1f1   : > { %v952_v21 = vpop.permute.xlu1 %951 }
 0x1f2   : > { %v995_v30 = vsel %vm994_vm13, %v993_v29, %v952_v21 }
 0x1f5   : > { %v956_v23 = vpop.permute.xlu1 %955 }
 0x1f6   : > { %v997_v32 = vsel %vm996_vm14, %v995_v30, %v956_v23 }
 0x1f9   : > { %v960_v28 = vpop.permute.xlu1 %959 }
 0x1fa   : > { %v999_v33 = vsel %vm998_vm15, %v997_v32, %v960_v28 }
 0x1fd   : > { %v964_v34 = vpop.permute.xlu1 %963  ;;  %2410 = vset.pattern.permute.xlu0 %v2548_v15 }
 0x1fe   : > { %v1001_v35 = vsel %vm1000_vm2, %v999_v33, %v964_v34  ;;  %v1077_v33 = vmul.f32 1e+12, %v2160_v24 }
 0x1ff   : > { %v2860_v36 = vadd.f32 %v2854_v31, %v1001_v35 }
 0x201   : > { %v971_v37 = vpop.permute.xlu1 %970  ;;  %v1084_v38 = vsel %vm1083_vm3, %v2860_v36, -inf }
 0x202   : > { %1085 = vmax.xlane.f32.xlu0 %v1084_v38  ;;  %v1003_v48 = vsel %vm990_vm10, %v1002_v47, %v971_v37  ;;  %v2895_v47 = vld [vmem:[%s2843_s17 + $0x18] sm:$0xff]  ;;  %s3153_s17 = smov 112  }
 0x205   : > { %v974_v39 = vpop.permute.xlu1 %973 }
 0x206   : > { %v1004_v50 = vsel %vm992_vm12, %v1003_v48, %v974_v39 }
 0x209   : > { %v977_v40 = vpop.permute.xlu1 %976 }
 0x20a   : > { %v1005_v51 = vsel %vm994_vm13, %v1004_v50, %v977_v40 }
 0x20d   : > { %v980_v41 = vpop.permute.xlu1 %979 }
 0x20e   : > { %v1006_v53 = vsel %vm996_vm14, %v1005_v51, %v980_v41 }
 0x211   : > { %v1011_v43 = vpop.permute.xlu1 %1010 }
 0x212   : > { %v1053_v44 = vsel %vm988_vm11, %v2812_v8, %v1011_v43  ;;  %v1138_v8 = vshrl.u32 %v1137_v4, 7 }
 0x213   : > { %v1054_v45 = vsel %vm990_vm10, %v1053_v44, %v1014_v17 }
 0x214   : > { %v1055_v9 = vsel %vm992_vm12, %v1054_v45, %v1017_v59  ;;  %v1139_v13 = vsub.s32 0, %v1138_v8  ;;  %v1310_v14 = vsub.s32 1, %v1138_v8  ;;  %v1484_v15 = vsub.s32 2, %v1138_v8 }
 0x215   : > { %v983_v49 = vpop.permute.xlu1 %982  ;;  %v1658_v23 = vsub.s32 3, %v1138_v8 }
 0x216   : > { %v1007_v54 = vsel %vm998_vm15, %v1006_v53, %v983_v49 }
 0x219   : > { %v986_v55 = vpop.permute.xlu1 %985 }
 0x21a   : > { %v1008_v56 = vsel %vm1000_vm2, %v1007_v54, %v986_v55  ;;  %v2161_v55 = vadd.f32 -1.0, %v2895_v47 }
 0x21b   : > { %v2879_v57 = vadd.f32 %v1076_v52, %v1008_v56 }
 0x21d   : > { %v1087_v58 = vsel %vm1083_vm3, %v2879_v57, -inf  ;;  %v1020_v60 = vpop.permute.xlu1 %1019 }
 0x21e   : > { %1088 = vmax.xlane.f32.xlu1 %v1087_v58  ;;  %v1056_v12 = vsel %vm994_vm13, %v1055_v9, %v1020_v60 }
 0x21f   : > { %v1057_v17 = vsel %vm996_vm14, %v1056_v12, %v1023_v62  ;;  %v1078_v62 = vmul.f32 1e+12, %v2161_v55 }
 0x220   : > { %v1058_v29 = vsel %vm998_vm15, %v1057_v17, %v1026_v0 }
 0x221   : > { %v1059_v32 = vsel %vm1000_vm2, %v1058_v29, %v1029_v2 }
 0x222   : > { %v1081_v43 = vadd.f32 %v1077_v33, %v1059_v32 }
 0x224   : > { %v1090_v49 = vsel %vm1083_vm3, %v1081_v43, -inf }
 0x22d   : > { %v1135_v61 = vpop.permute.xlu1 %1134  ;;  %v1480_v5 = vpop.permute.xlu0 %1479 }
 0x231   : > { %v1033_v63 = vpop.permute.xlu1 %1032  ;;  %v1042_v10 = vpop.permute.xlu0 %1041 }
 0x232   : > { %v1060_v51 = vsel %vm988_vm11, %v2804_v7, %v1033_v63  ;;  %vm1857_vm11 = vcmask 457728  }
 0x235   : > { %v1306_v1 = vpop.permute.xlu1 %1305 }
 0x239   : > { %v1036_v6 = vpop.permute.xlu1 %1035 }
 0x23a   : > { %v1061_v54 = vsel %vm990_vm10, %v1060_v51, %v1036_v6  ;;  %vm1855_vm10 = vcmask 392192  }
 0x23d   : > { %v1654_v11 = vpop.permute.xlu1 %1653 }
 0x241   : > { %v1039_v21 = vpop.permute.xlu1 %1038 }
 0x242   : > { %v1062_v56 = vsel %vm992_vm12, %v1061_v54, %v1039_v21  ;;  %vm1859_vm12 = vcmask 523264  }
 0x245   : > { %v1045_v39 = vpop.permute.xlu1 %1044 }
 0x249   : > { %v1048_v48 = vpop.permute.xlu1 %1047 }
 0x250   : > { %v717_v18 = vpop.trf.xlu0 }
 0x251   : > { %v1140_v19 = vrot.slane %v717_v18, %v1139_v13  ;;  %v1311_v20 = vrot.slane %v717_v18, %v1310_v14  ;;  %v1485_v28 = vrot.slane %v717_v18, %v1484_v15  ;;  %v1659_v35 = vrot.slane %v717_v18, %v1658_v23 }
 0x253   : > { %v1141_v25 = vadd.f32 %v1140_v19, %v1135_v61  ;;  %v1312_v27 = vadd.f32 %v1311_v20, %v1306_v1  ;;  %v1486_v34 = vadd.f32 %v1485_v28, %v1480_v5  ;;  %v1660_v44 = vadd.f32 %v1659_v35, %v1654_v11  ;;  %v1051_v61 = vpop.permute.xlu1 %1050 }
 0x255   : > { %vm1142_vm4 = vcmp.ge.f32.partialorder %v1141_v25, 0.0  ;;  %v1143_v30 = vmul.f32 0.2, %v1141_v25  ;;  %v1314_v38 = vmul.f32 0.2, %v1312_v27  ;;  %vm1313_vm5 = vcmp.ge.f32.partialorder %v1312_v27, 0.0 }
 0x256   : > { %v1488_v46 = vmul.f32 0.2, %v1486_v34  ;;  %vm1487_vm6 = vcmp.ge.f32.partialorder %v1486_v34, 0.0  ;;  %v1662_v53 = vmul.f32 0.2, %v1660_v44  ;;  %vm1661_vm7 = vcmp.ge.f32.partialorder %v1660_v44, 0.0 }
 0x257   : > { %v1144_v37 = vsel %vm1142_vm4, %v1141_v25, %v1143_v30  ;;  %v1315_v45 = vsel %vm1313_vm5, %v1312_v27, %v1314_v38 }
 0x258   : > { %v1145_v40 = vadd.f32 %v1144_v37, %v2854_v31  ;;  %v1316_v50 = vadd.f32 %v1315_v45, %v1076_v52  ;;  %v1489_v31 = vsel %vm1487_vm6, %v1486_v34, %v1488_v46  ;;  %v1663_v60 = vsel %vm1661_vm7, %v1660_v44, %v1662_v53 }
 0x259   : > { %v1490_v59 = vadd.f32 %v1489_v31, %v1077_v33  ;;  %v1063_v52 = vsel %vm994_vm13, %v1062_v56, %v1042_v10  ;;  %v1664_v1 = vadd.f32 %v1663_v60, %v1078_v62 }
 0x25a   : > { %v1146_v41 = vsel %vm1083_vm3, %v1145_v40, -inf  ;;  %v1317_v58 = vsel %vm1083_vm3, %v1316_v50, -inf  ;;  %v1064_v7 = vsel %vm996_vm14, %v1063_v52, %v1045_v39 }
 0x25b   : > { %1147 = vmax.xlane.f32.xlu1 %v1146_v41  ;;  %v1065_v63 = vsel %vm998_vm15, %v1064_v7, %v1048_v48  ;;  %v1491_v0 = vsel %vm1083_vm3, %v1490_v59, -inf  ;;  %v1665_v4 = vsel %vm1083_vm3, %v1664_v1, -inf }
 0x25c   : > { %v1066_v2 = vsel %vm1000_vm2, %v1065_v63, %v1051_v61 }
 0x25d   : > { %v1082_v5 = vadd.f32 %v1078_v62, %v1066_v2 }
 0x25f   : > { %1091 = vmax.xlane.f32.xlu1 %v1090_v49  ;;  %v1093_v6 = vsel %vm1083_vm3, %v1082_v5, -inf }
 0x263   : > { %1318 = vmax.xlane.f32.xlu1 %v1317_v58 }
 0x267   : > { %1492 = vmax.xlane.f32.xlu1 %v1491_v0 }
 0x26b   : > { %1666 = vmax.xlane.f32.xlu1 %v1665_v4 }
 0x26f   : > { %1094 = vmax.xlane.f32.xlu1 %v1093_v6 }
 0x280   : > { %1329 = vrot.lane.b32.xlu1 %v2760_v26, %s2540_s30  ;;  %s3152_s30 = smov 104  }
 0x28b   : > { %v1086_v8 = vpop.xlane.xlu0 %1085 }
 0x28c   : > { %v1096_v9 = vsub.f32 %v2860_v36, %v1086_v8 }
 0x28e   : > { %v1100_v12 = vmul.f32 1.442695, %v1096_v9 }
 0x2a7   : > { %v1089_v10 = vpop.xlane.xlu1 %1088 }
 0x2a8   : > { %v1097_v11 = vsub.f32 %v2879_v57, %v1089_v10 }
 0x2aa   : > { %v1102_v13 = vmul.f32 1.442695, %v1097_v11 }
 0x2ac   : > { %2411 = vpow2.f32 %v1102_v13 }
 0x2ad   : > { %2413 = vpow2.f32 %v1100_v12 }
 0x2b9   : > { %v2915_v14 = vpop.eup %2411 }
 0x2ba   : > { %v1111_v15 = vsel %vm1083_vm3, %v2915_v14, 0.0  ;;  %v2919_v17 = vpop.eup %2413 }
 0x2bb   : > { %1112 = vadd.xlane.f32.xlu0 %v1111_v15  ;;  %v1108_v18 = vsel %vm1083_vm3, %v2919_v17, 0.0 }
 0x2bf   : > { %1109 = vadd.xlane.f32.xlu0 %v1108_v18 }
 0x2e4   : > { %v1148_v36 = vpop.xlane.xlu1 %1147 }
 0x2e5   : > { %v1149_v19 = vsub.f32 %v1145_v40, %v1148_v36 }
 0x2e7   : > { %v1150_v20 = vmul.f32 1.442695, %v1149_v19 }
 0x2e8   : > { %v1092_v57 = vpop.xlane.xlu1 %1091 }
 0x2e9   : > { %2415 = vpow2.f32 %v1150_v20  ;;  %v1098_v21 = vsub.f32 %v1081_v43, %v1092_v57  ;;  %v1904_v57 = vld [vmem:[%s3131_s9 + $0x38] sm:$0xff] }
 0x2eb   : > { %v1104_v23 = vmul.f32 1.442695, %v1098_v21  ;;  %v1903_v21 = vld [vmem:[%s3131_s9 + $0x30] sm:$0xff] }
 0x2ec   : > { %v1319_v24 = vpop.xlane.xlu1 %1318 }
 0x2ed   : > { %2417 = vpow2.f32 %v1104_v23  ;;  %v1320_v25 = vsub.f32 %v1316_v50, %v1319_v24 }
 0x2ef   : > { %v1321_v27 = vmul.f32 1.442695, %v1320_v25 }
 0x2f0   : > { %v1493_v28 = vpop.xlane.xlu1 %1492 }
 0x2f1   : > { %2419 = vpow2.f32 %v1321_v27  ;;  %v1494_v29 = vsub.f32 %v1490_v59, %v1493_v28  ;;  %v1901_v27 = vld [vmem:[%s3131_s9 + $0x20] sm:$0xff]  ;;  %v1900_v28 = vld [vmem:[%s3131_s9 + $0x18] sm:$0xff] }
 0x2f3   : > { %v1495_v30 = vmul.f32 1.442695, %v1494_v29 }
 0x2f4   : > { %v1667_v32 = vpop.xlane.xlu1 %1666 }
 0x2f5   : > { %2421 = vpow2.f32 %v1495_v30  ;;  %v1668_v33 = vsub.f32 %v1664_v1, %v1667_v32  ;;  %v1899_v32 = vld [vmem:[%s3131_s9 + $0x10] sm:$0xff] }
 0x2f6   : > { %v2416_v34 = vpop.eup %2415 }
 0x2f7   : > { %v1669_v35 = vmul.f32 1.442695, %v1668_v33  ;;  %v1152_v37 = vsel %vm1083_vm3, %v2416_v34, 0.0  ;;  %v1898_v33 = vld [vmem:[%s3131_s9 + $0x8] sm:$0xff] }
 0x2f8   : > { %1153 = vadd.xlane.f32.xlu1 %v1152_v37  ;;  %v1095_v38 = vpop.xlane.xlu1 %1094 }
 0x2f9   : > { %2423 = vpow2.f32 %v1669_v35  ;;  %v1099_v39 = vsub.f32 %v1082_v5, %v1095_v38  ;;  %v1897_v38 = vld [vmem:[%s3131_s9] sm:$0xff] }
 0x2fa   : > { %v2924_v40 = vpop.eup %2417 }
 0x2fb   : > { %v1106_v41 = vmul.f32 1.442695, %v1099_v39  ;;  %v1114_v43 = vsel %vm1083_vm3, %v2924_v40, 0.0 }
 0x2fc   : > { %1115 = vadd.xlane.f32.xlu0 %v1114_v43  ;;  %v1330_v54 = vpop.permute.xlu1 %1329 }
 0x2fd   : > { %2425 = vpow2.f32 %v1106_v41 }
 0x2fe   : > { %v2420_v44 = vpop.eup %2419 }
 0x2ff   : > { %v1323_v45 = vsel %vm1083_vm3, %v2420_v44, 0.0 }
 0x300   : > { %1324 = vadd.xlane.f32.xlu1 %v1323_v45 }
 0x302   : > { %v2422_v46 = vpop.eup %2421 }
 0x303   : > { %v1497_v48 = vsel %vm1083_vm3, %v2422_v46, 0.0 }
 0x304   : > { %1498 = vadd.xlane.f32.xlu1 %v1497_v48 }
 0x306   : > { %v2424_v49 = vpop.eup %2423 }
 0x307   : > { %v1671_v50 = vsel %vm1083_vm3, %v2424_v49, 0.0 }
 0x308   : > { %1672 = vadd.xlane.f32.xlu1 %v1671_v50 }
 0x30a   : > { %v2931_v51 = vpop.eup %2425 }
 0x30b   : > { %v1117_v31 = vsel %vm1083_vm3, %v2931_v51, 0.0 }
 0x30c   : > { %1118 = vadd.xlane.f32.xlu0 %v1117_v31 }
 0x319   : > { %1677 = vrot.lane.b32.xlu1 %v2760_v26, %s3152_s30 }
 0x322   : > { %1503 = vrot.lane.b32.xlu0 %v2760_v26, %s3153_s17  ;;  %s2550_s17 = smov 24  }
 0x344   : > { %v1113_v53 = vpop.xlane.xlu0 %1112 }
 0x348   : > { %v1110_v55 = vpop.xlane.xlu0 %1109 }
 0x349   : > { %2427 = vrcp.f32 %v1110_v55 }
 0x356   : > { %v2428_v52 = vpop.eup %2427 }
 0x357   : > { %v1121_v0 = vmul.f32 %v2428_v52, %v2919_v17 }
 0x359   : > { %v2950_v4 = vmul.f32 %v1121_v0, %v2846_v22 }
 0x381   : > { %v1154_v56 = vpop.xlane.xlu1 %1153 }
 0x382   : > { %2429 = vrcp.f32 %v1154_v56 }
 0x383   : > { %2431 = vrcp.f32 %v1113_v53 }
 0x385   : > { %v1116_v59 = vpop.xlane.xlu0 %1115 }
 0x389   : > { %v1325_v58 = vpop.xlane.xlu1 %1324 }
 0x38a   : > { %2433 = vrcp.f32 %v1325_v58 }
 0x38b   : > { %2435 = vrcp.f32 %v1116_v59 }
 0x38d   : > { %v1499_v60 = vpop.xlane.xlu1 %1498 }
 0x38e   : > { %2437 = vrcp.f32 %v1499_v60 }
 0x38f   : > { %v2430_v61 = vpop.eup %2429 }
 0x390   : > { %v1156_v62 = vmul.f32 %v2430_v61, %v2416_v34  ;;  %v2432_v2 = vpop.eup %2431 }
 0x391   : > { %v1673_v7 = vpop.xlane.xlu1 %1672 }
 0x392   : > { %2439 = vrcp.f32 %v1673_v7  ;;  %v2940_v63 = vmul.f32 %v1156_v62, %v2846_v22  ;;  %v1123_v22 = vmul.f32 %v2432_v2, %v2915_v14 }
 0x394   : > { %2286 = vmatmul.mubr.msk.f32.vlgmr.msra.gmra.mxu0 %vm1083_vm3, %v2940_v63  ;;  %v2971_v13 = vmul.f32 %v1123_v22, %v2865_v42 }
 0x395   : > { %2289 = vmatpush3.msra.mxu0 %v2760_v26  ;;  %v1119_v1 = vpop.xlane.xlu0 %1118  ;;  %2290 = vmatprep.mubr.msk.f32.mxu0 %vm2537_vm1, %v2536_v3  ;;  %v1678_v17 = vpop.permute.xlu1 %1677 }
 0x396   : > { %2441 = vrcp.f32 %v1119_v1  ;;  %2293 = vmatprep.subr.mxu0 %v2536_v3 }
 0x397   : > { %v2434_v5 = vpop.eup %2433 }
 0x398   : > { %2291 = vmatmul.mubr.msk.f32.vlgmr.msra.gmra.mxu0 %vm1083_vm3, %v2950_v4  ;;  %v1327_v6 = vmul.f32 %v2434_v5, %v2420_v44  ;;  %v2436_v26 = vpop.eup %2435 }
 0x399   : > { %2294 = vmatpush3.msra.mxu0 %v1330_v54  ;;  %v1504_v8 = vpop.permute.xlu0 %1503  ;;  %2295 = vmatprep.mubr.msk.f32.mxu0 %vm2537_vm1, %v2536_v3  ;;  %v1125_v14 = vmul.f32 %v2436_v26, %v2924_v40 }
 0x39a   : > { %2304 = vmatpush3.msra.mxu1 %v1504_v8  ;;  %2298 = vmatprep.subr.mxu0 %v2536_v3  ;;  %v2958_v9 = vmul.f32 %v1327_v6, %v2865_v42 }
 0x39b   : > { %v2438_v10 = vpop.eup %2437  ;;  %2313 = vmatprep.subr.mxu1 %v2536_v3  ;;  %v2983_v42 = vmul.f32 %v1125_v14, %v2886_v16 }
 0x39c   : > { %v1501_v11 = vmul.f32 %v2438_v10, %v2422_v46  ;;  %2296 = vmatmul.mubr.msk.f32.vlgmr.msra.gmra.mxu0 %vm1083_vm3, %v2958_v9 }
 0x39d   : > { %2299 = vmatpush3.msra.mxu0 %v1330_v54  ;;  %2300 = vmatprep.mubr.msk.f32.mxu0 %vm2537_vm1, %v2536_v3 }
 0x39e   : > { %v2967_v12 = vmul.f32 %v1501_v11, %v2886_v16  ;;  %2308 = vmatprep.subr.mxu0 %v2536_v3 }
 0x39f   : > { %v2440_v15 = vpop.eup %2439 }
 0x3a0   : > { %2301 = vmatmul.mubr.msk.f32.vlgmr.msra.gmra.mxu0 %vm1083_vm3, %v2971_v13  ;;  %2306 = vmatmul.mubr.msk.f32.vlgmr.msra.gmra.mxu1 %vm1083_vm3, %v2967_v12  ;;  %v1675_v18 = vmul.f32 %v2440_v15, %v2424_v49 }
 0x3a1   : > { %2309 = vmatpush3.msra.mxu0 %v1504_v8  ;;  %2314 = vmatpush3.msra.mxu1 %v1678_v17 }
 0x3a2   : > { %2310 = vmatprep.mubr.msk.f32.mxu0 %vm2537_vm1, %v2536_v3  ;;  %2315 = vmatprep.mubr.msk.f32.mxu1 %vm2537_vm1, %v2536_v3  ;;  %v2986_v36 = vmul.f32 %v1675_v18, %v2895_v47 }
 0x3a3   : > { %v2442_v19 = vpop.eup %2441  ;;  %2318 = vmatprep.subr.mxu0 %v2536_v3  ;;  %2323 = vmatprep.subr.mxu1 %v2536_v3 }
 0x3a4   : > { %2311 = vmatmul.mubr.msk.f32.vlgmr.msra.gmra.mxu0 %vm1083_vm3, %v2983_v42  ;;  %2316 = vmatmul.mubr.msk.f32.vlgmr.msra.gmra.mxu1 %vm1083_vm3, %v2986_v36  ;;  %v1127_v20 = vmul.f32 %v2442_v19, %v2931_v51 }
 0x3a5   : > { %2319 = vmatpush3.msra.mxu0 %v1678_v17  ;;  %2320 = vmatprep.mubr.msk.f32.mxu0 %vm2537_vm1, %v2536_v3 }
 0x3a6   : > { %v1131_v16 = vmul.f32 %v1127_v20, %v2895_v47  ;;  %2339 = vmatprep.mubr.msk.f32.mxu1 %vm2537_vm1, %v2536_v3  ;;  %2324 = vmatpush3.msra.mxu1 %v1904_v57  ;;  %v1902_v47 = vld [vmem:[%s3131_s9 + $0x28] sm:$0xff]  ;;  %vm1848_vm1 = vcmask 130048  }
 0x3a7   : > { %2325 = vmatprep.subr.mxu1 %v2536_v3 }
 0x3a8   : > { %2321 = vmatmul.mubr.msk.f32.vlgmr.msra.gmra.mxu0 %vm1083_vm3, %v1131_v16  ;;  %2326 = vmatpush3.msra.mxu1 %v1903_v21 }
 0x3a9   : > { %2327 = vmatprep.subr.mxu1 %v2536_v3 }
 0x3aa   : > { %2328 = vmatpush3.msra.mxu1 %v1902_v47 }
 0x3ab   : > { %2329 = vmatprep.subr.mxu1 %v2536_v3 }
 0x3ac   : > { %2330 = vmatpush3.msra.mxu1 %v1901_v27 }
 0x3ad   : > { %2331 = vmatprep.subr.mxu1 %v2536_v3 }
 0x3ae   : > { %2332 = vmatpush3.msra.mxu1 %v1900_v28 }
 0x3af   : > { %2333 = vmatprep.subr.mxu1 %v2536_v3 }
 0x3b0   : > { %2334 = vmatpush3.msra.mxu1 %v1899_v32 }
 0x3b1   : > { %2335 = vmatprep.subr.mxu1 %v2536_v3 }
 0x3b2   : > { %2336 = vmatpush3.msra.mxu1 %v1898_v33 }
 0x3b3   : > { %2337 = vmatprep.subr.mxu1 %v2536_v3 }
 0x3b4   : > { %2338 = vmatpush3.msra.mxu1 %v1897_v38 }
 0x454   : > { %v1227_v23 = vpop.f32.mrf.mxu0 }
 0x456   : > { %v2287_v24 = vpop.f32.mrf.mxu0 }
 0x458   : > { %v1300_v25 = vpop.f32.mrf.mxu0 }
 0x45a   : > { %v2292_v29 = vpop.f32.mrf.mxu0 }
 0x45c   : > { %v1401_v30 = vpop.f32.mrf.mxu0 }
 0x45e   : > { %v2297_v34 = vpop.f32.mrf.mxu0 }
 0x460   : > { %v1474_v35 = vpop.f32.mrf.mxu0  ;;  %v1575_v37 = vpop.f32.mrf.mxu1 }
 0x461   : > { %1867 = vrot.lane.b32.xlu1 %v1575_v37, %s2549_s16 }
 0x462   : > { %v2302_v39 = vpop.f32.mrf.mxu0  ;;  %v2307_v40 = vpop.f32.mrf.mxu1 }
 0x464   : > { %v1648_v41 = vpop.f32.mrf.mxu0  ;;  %v1749_v43 = vpop.f32.mrf.mxu1 }
 0x465   : > { %1871 = vrot.lane.b32.xlu0 %v1749_v43, %s2550_s17  ;;  %1863 = vrot.lane.b32.xlu1 %v1401_v30, %s2551_s18 }
 0x466   : > { %v2312_v44 = vpop.f32.mrf.mxu0  ;;  %v2317_v45 = vpop.f32.mrf.mxu1 }
 0x468   : > { %v1822_v46 = vpop.f32.mrf.mxu0 }
 0x469   : > { %1875 = vrot.lane.b32.xlu1 %v1300_v25, %s2552_s19  ;;  %1879 = vrot.lane.b32.xlu0 %v1474_v35, %s2553_s20 }
 0x46a   : > { %v2322_v3 = vpop.f32.mrf.mxu0 }
 0x46d   : > { %1883 = vrot.lane.b32.xlu1 %v1648_v41, %s2554_s29  ;;  %1887 = vrot.lane.b32.xlu0 %v1822_v46, %s2555_s15 }
 0x471   : > { %1826 = vrot.lane.b32.xlu1 %v2958_v9, %s2551_s18  ;;  %1829 = vrot.lane.b32.xlu0 %v2967_v12, %s2549_s16  ;;  %s3051_s16 = sand.u32 1, %s2526_s22  }
 0x472   : > { %s3137_s28 = sshll.u32 %s3051_s16, 3 }
 0x473   : > { %s447_s30 = scalar_lea.vmem [#allocation4], %s3137_s28 }
 0x475   : > { %1832 = vrot.lane.b32.xlu1 %v2986_v36, %s2550_s17  ;;  %1835 = vrot.lane.b32.xlu0 %v2950_v4, %s2552_s19  ;;  %s3138_s17 = sshll.u32 %s2644_s25, 7 }
 0x479   : > { %1838 = vrot.lane.b32.xlu1 %v2971_v13, %s2553_s20  ;;  %1841 = vrot.lane.b32.xlu0 %v2983_v42, %s2554_s29  ;;  %s2017_s20 = scalar_lea.hbm %s3134_s12, %s3138_s17  ;;  %s2019_s29 = sshll.u32 %s447_s30, 4  ;;  %s2020_s29 = int_to_ptr.vmem [resolvable:$true] %s2019_s29 }
 0x47a   : > { %s2444_s0 = scalar_lea.vmem %s2020_s29, 128  ;;  %p2451_p2 = scmp.lt.s32.totalorder %s2020_s29, %s2449_s2 }
 0x47b   : > { %p2445_p13 = scmp.ne.s32.totalorder %s2020_s29, %s2444_s0  ;;  %p2452_p3 = scmp.lt.s32.totalorder %s2450_s3, %s2444_s0 }
 0x47d   : > { %1844 = vrot.lane.b32.xlu1 %v1131_v16, %s2555_s15  ;;  %s1993_s15 = scalar_lea.sflag [#allocation5], %s3051_s16  ;;  %p2446_p0 = pnand %p2445_p13, %p2661_p5 }
 0x47e   : > { %p2453_p4 = por %p2452_p3, %p2451_p2 }
 0x47f   : > { %p2447_p1 = pneg %p2446_p0 }
 0x481   : > { %p2454_p7 = pnand %p2453_p4, %p2447_p1 }
 0x4d3   : > { %v1868_v48 = vpop.permute.xlu1 %1867 }
 0x4d7   : > { %v1872_v49 = vpop.permute.xlu0 %1871  ;;  %v1864_v50 = vpop.permute.xlu1 %1863 }
 0x4d8   : > { %v1890_v51 = vsel %vm1083_vm3, %v1227_v23, %v1864_v50 }
 0x4d9   : > { %v1891_v31 = vsel %vm1848_vm1, %v1890_v51, %v1868_v48 }
 0x4da   : > { %v1892_v53 = vsel %vm1850_vm8, %v1891_v31, %v1872_v49 }
 0x4db   : > { %v1876_v54 = vpop.permute.xlu1 %1875  ;;  %v1880_v55 = vpop.permute.xlu0 %1879 }
 0x4dc   : > { %v1893_v56 = vsel %vm476_vm0, %v1892_v53, %v1876_v54 }
 0x4dd   : > { %v1894_v58 = vsel %vm1853_vm9, %v1893_v56, %v1880_v55 }
 0x4df   : > { %v1884_v59 = vpop.permute.xlu1 %1883  ;;  %v1888_v60 = vpop.permute.xlu0 %1887 }
 0x4e0   : > { %v1895_v52 = vsel %vm1855_vm10, %v1894_v58, %v1884_v59 }
 0x4e1   : > { %v1896_v61 = vsel %vm1857_vm11, %v1895_v52, %v1888_v60 }
 0x4e2   : > { %2340 = vmatmul.mubr.msk.f32.vlgmr.msra.gmra.mxu1 %vm1859_vm12, %v1896_v61 }
 0x4e3   : > { %v1827_v62 = vpop.permute.xlu1 %1826  ;;  %v1830_v7 = vpop.permute.xlu0 %1829 }
 0x4e4   : > { %v1847_v0 = vsel %vm1083_vm3, %v2940_v63, %v1827_v62 }
 0x4e5   : > { %v1849_v1 = vsel %vm1848_vm1, %v1847_v0, %v1830_v7 }
 0x4e7   : > { %v1833_v2 = vpop.permute.xlu1 %1832  ;;  %v1836_v4 = vpop.permute.xlu0 %1835 }
 0x4e8   : > { %v1851_v5 = vsel %vm1850_vm8, %v1849_v1, %v1833_v2 }
 0x4e9   : > { %v1852_v6 = vsel %vm476_vm0, %v1851_v5, %v1836_v4 }
 0x4eb   : > { %v1839_v8 = vpop.permute.xlu1 %1838  ;;  %v1842_v63 = vpop.permute.xlu0 %1841 }
 0x4ec   : > { %v1854_v26 = vsel %vm1853_vm9, %v1852_v6, %v1839_v8 }
 0x4ed   : > { %v1856_v9 = vsel %vm1855_vm10, %v1854_v26, %v1842_v63 }
 0x4ef   : > { %v1845_v22 = vpop.permute.xlu1 %1844 }
 0x4f0   : > { %v1858_v10 = vsel %vm1857_vm11, %v1856_v9, %v1845_v22 }
 0x4f1   : > { %v1860_v11 = vsel %vm1859_vm12, %v1858_v10, 0.0 }
 0x4f2   : > { %1861 = vst [vmem:[%s447_s30] sm:$0xff] %v1860_v11 }
 0x4f3   : > { %2457 = shalt.err (!%p2454_p7)
}
 0x4f4   : > { %s2458_s28 = scalar_lea.hbm %s2017_s20, 128  ;;  %s2462_s19 = scalar_lea.hbm %s3134_s12, 256 }
 0x4f5   : > { %p2459_p8 = scmp.ne.s32.totalorder %s2017_s20, %s2458_s28  ;;  %p2463_p11 = scmp.lt.s32.totalorder %s2017_s20, %s3134_s12 }
 0x4f6   : > { %p2464_p12 = scmp.lt.s32.totalorder %s2462_s19, %s2458_s28 }
 0x4f7   : > { %p2460_p9 = pnand %p2459_p8, %p2661_p5 }
 0x4f8   : > { %p2465_p13 = por %p2464_p12, %p2463_p11 }
 0x4f9   : > { %p2461_p10 = pneg %p2460_p9 }
 0x4fb   : > { %p2466_p0 = pnand %p2465_p13, %p2461_p10 }
 0x4fd   : > { %2469 = shalt.err (!%p2466_p0)
}
 0x4fe   : > { %2343 = dma.vmem_to_hbm [thread:$0]  (%p2661_p5), %s2020_s29, 128, %s2017_s20, %s1993_s15   ;;  %v2170_v12 = vld [vmem:[%s3132_s10] ss:$0 sm:$0xff] }
 0x4ff   : > { %s3154_s2 = sshll.u32 %s3051_s16, 3  ;;  %v2443_v17 = vld [vmem:[%s2711_s26] sm:$0xff]  ;;  %s3155_s28 = sshll.u32 %s2644_s25, 7 }
 0x500   : > { %s440_s3 = scalar_lea.vmem [#allocation2], %s3154_s2  ;;  %s2004_s18 = scalar_lea.hbm %s3133_s11, %s3155_s28 }
 0x501   : > { %s2006_s4 = sshll.u32 %s440_s3, 4  ;;  %s1988_s20 = scalar_lea.sflag [#allocation3], %s3051_s16  ;;  %s2007_s4 = int_to_ptr.vmem [resolvable:$true] %s2006_s4 }
 0x502   : > { %s2470_s29 = scalar_lea.vmem %s2007_s4, 128  ;;  %s2557_s15 = smov [#allocation2]  }
 0x503   : > { %p2471_p1 = scmp.ne.s32.totalorder %s2007_s4, %s2470_s29  ;;  %s2474_s19 = sshll.u32 %s2557_s15, 4  ;;  %s2475_s19 = int_to_ptr.vmem [resolvable:$false] %s2474_s19 }
 0x504   : > { %s2476_s0 = scalar_lea.vmem %s2475_s19, 256  ;;  %p2477_p4 = scmp.lt.s32.totalorder %s2007_s4, %s2475_s19 }
 0x505   : > { %p2472_p2 = pnand %p2471_p1, %p2661_p5  ;;  %p2478_p7 = scmp.lt.s32.totalorder %s2476_s0, %s2470_s29 }
 0x507   : > { %p2473_p3 = pneg %p2472_p2  ;;  %p2479_p8 = por %p2478_p7, %p2477_p4 }
 0x509   : > { %p2480_p9 = pnand %p2479_p8, %p2473_p3 }
 0x5a2   : > { %v1981_v13 = vpop.f32.mrf.mxu1 }
 0x5a3   : > { %v1982_v14 = vadd.f32 %v2170_v12, %v1981_v13 }
 0x5a4   : > { %v2341_v15 = vpop.f32.mrf.mxu1 }
 0x5a5   : > { %v1985_v18 = vadd.f32 %v2443_v17, %v1982_v14 }
 0x5a7   : > { %1986 = vst.msk [vmem:[%s440_s3] sm:$0xff] %vm476_vm0, %v1985_v18 }
 0x5a8   : > { %2483 = shalt.err (!%p2480_p9)
}
 0x5a9   : > { %s2484_s25 = scalar_lea.hbm %s2004_s18, 128  ;;  %s2488_s1 = scalar_lea.hbm %s3133_s11, 256 }
 0x5aa   : > { %p2485_p10 = scmp.ne.s32.totalorder %s2004_s18, %s2484_s25  ;;  %p2489_p13 = scmp.lt.s32.totalorder %s2004_s18, %s3133_s11 }
 0x5ab   : > { %p2490_p0 = scmp.lt.s32.totalorder %s2488_s1, %s2484_s25 }
 0x5ac   : > { %p2486_p11 = pnand %p2485_p10, %p2661_p5 }
 0x5ad   : > { %p2491_p1 = por %p2490_p0, %p2489_p13 }
 0x5ae   : > { %p2487_p12 = pneg %p2486_p11 }
 0x5b0   : > { %p2492_p2 = pnand %p2491_p1, %p2487_p12 }
 0x5b2   : > { %2495 = shalt.err (!%p2492_p2)
}
 0x5b3   : > { %2342 = dma.vmem_to_hbm [thread:$0]  (%p2661_p5), %s2007_s4, 128, %s2004_s18, %s1988_s20  }
 0x5b4 PF: > { %p2353_p3 = scmp.ge.s32.totalorder %s2534_s24, 2  ;;  %s2031_s28 = sand.u32 1, %s2522_s21  }
 0x5b5   : > { %s2032_s17 = scalar_lea.sflag [#allocation3], %s2031_s28 }
 0x5b6   : > { %p2347_p4 = pnand %p2353_p3, %p2665_p6 }
 0x5b8   : > { %p2348_p7 = pneg %p2347_p4 }
 0x5ba   : > { %2513 = dma.done.wait (%p2348_p7), %s2032_s17, 128  }
 0x5bb   : > { %2515 = vsyncadd (%p2348_p7), %s2032_s17, 4294967168  ;;  %s2041_s30 = scalar_lea.sflag [#allocation5], %s2031_s28 }
 0x5bc   : > { %2517 = dma.done.wait (%p2348_p7), %s2041_s30, 128  }
 0x5bd   : > { %2519 = vsyncadd (%p2348_p7), %s2041_s30, 4294967168  ;;  %s3156_s13 = sld [smem:[#allocation8_spill]]  ;;  %p26_p5 = scmp.ge.s32.totalorder %s2648_s27, 4  }
 0x5be   : > { %s3157_s21 = smov %s2526_s22  ;;  %s3158_s22 = smov %s2530_s23 }
 0x5bf   : > { %s3160_s24 = smov %s2648_s27  ;;  %28 = sbr.rel (!%p26_p5) target bundleno = 11 (0xb), region = 122 }
 0x5c3   : > { %s3159_s23 = smov %s3156_s13 }
 0x5c4   :  { %2046 = vsyncpa [#allocation3], 1 }
 0x5c5   :  { %2048 = vsyncpa [#allocation3 + $0x1], 1 }
 0x5c6   :  { %2049 = vsyncpa [#allocation5], 1 }
 0x5c7   :  { %2051 = vsyncpa [#allocation5 + $0x1], 1 }

</bundles_post_ra>
